<compile_context>
chip_gen: v7x
topology: tpu7x:2x2x1
jax: 0.10.0
libtpu: 0.0.40
codegen_flags: <defaults>
</compile_context>

<pallas_src>
import functools
import math

import jax
import jax.numpy as jnp
from jax.experimental import pallas as pl
from jax.experimental.pallas import tpu as pltpu

D_HIDN = 256
N_HEAD = 4
D_HEAD = 64


def _pick_tile(n, candidates=(512, 256, 128, 64, 32, 16, 8)):
    """Largest candidate that evenly divides n, else the full extent."""
    for c in candidates:
        if n % c == 0:
            return c
    return n


# ---------------------------------------------------------------------------
# Kernel 1: fused Q/K/V projections   *_out = x_* @ W_* + b_*
# ---------------------------------------------------------------------------
def _qkv_proj_kernel(xq_ref, xk_ref, xv_ref,
                     wq_ref, wk_ref, wv_ref,
                     bq_ref, bk_ref, bv_ref,
                     q_out, k_out, v_out):
    def proj(x_ref, w_ref, b_ref, o_ref):
        y = jnp.dot(x_ref[...], w_ref[...], preferred_element_type=jnp.float32)
        o_ref[...] = (y + b_ref[...]).astype(o_ref.dtype)

    proj(xq_ref, wq_ref, bq_ref, q_out)
    proj(xk_ref, wk_ref, bk_ref, k_out)
    proj(xv_ref, wv_ref, bv_ref, v_out)


def pallas_qkv_proj(xq, xk, xv, wq, wk, wv, bq, bk, bv):
    """xq/xk/xv: (M, 256) f32; w*: (256, 256); b*: (256,) -> three (M, 256)."""
    M, K = xq.shape
    N = wq.shape[1]
    tm = _pick_tile(M)
    grid = (M // tm,)

    x_spec = pl.BlockSpec((tm, K), lambda m: (m, 0))
    w_spec = pl.BlockSpec((K, N), lambda m: (0, 0))
    b_spec = pl.BlockSpec((1, N), lambda m: (0, 0))
    o_spec = pl.BlockSpec((tm, N), lambda m: (m, 0))

    return pl.pallas_call(
        _qkv_proj_kernel,
        grid=grid,
        in_specs=[x_spec, x_spec, x_spec,
                  w_spec, w_spec, w_spec,
                  b_spec, b_spec, b_spec],
        out_specs=(o_spec, o_spec, o_spec),
        out_shape=(jax.ShapeDtypeStruct((M, N), jnp.float32),) * 3,
        compiler_params=pltpu.CompilerParams(dimension_semantics=("parallel",)),
    )(xq, xk, xv, wq, wk, wv,
      bq.reshape(1, N), bk.reshape(1, N), bv.reshape(1, N))


# ---------------------------------------------------------------------------
# Kernel 2: attention (all heads) + fused output projection for one
#           (batch, query-tile) grid step.
# ---------------------------------------------------------------------------
def _attn_kernel(q_ref, k_ref, v_ref, m_ref, wo_ref, bo_ref,
                 out_ref, prob_ref):
    q = q_ref[...]                              # (TQ, H*D), already * 1/sqrt(D)
    k = k_ref[...]                              # (S,  H*D)
    v = v_ref[...]                              # (S,  H*D)
    masked = m_ref[...].astype(jnp.float32) > 0.0   # (TQ, S) bool (from int8)

    tq = q.shape[0]
    out_acc = jnp.zeros((tq, D_HIDN), jnp.float32)

    for h in range(N_HEAD):                     # static, H = 4
        sl = slice(h * D_HEAD, (h + 1) * D_HEAD)
        q_h, k_h, v_h = q[:, sl], k[:, sl], v[:, sl]

        # scores = (q * scale) @ k^T   (scale folded into W_Q upstream)
        scores = jax.lax.dot_general(
            q_h, k_h, (((1,), (1,)), ((), ())),
            preferred_element_type=jnp.float32)           # (TQ, S)
        scores = jnp.where(masked, jnp.float32(-1e9), scores)

        mx = jnp.max(scores, axis=-1, keepdims=True)
        e = jnp.exp(scores - mx)
        denom = jnp.sum(e, axis=-1, keepdims=True)
        probs = e * pl.reciprocal(denom, approx=True)     # EUP slot, ~free

        prob_ref[h, :, :] = probs.astype(prob_ref.dtype)

        ctx_h = jnp.dot(probs, v_h, preferred_element_type=jnp.float32)  # (TQ, D)
        # fused output projection: accumulate ctx_h @ W_O[h*D:(h+1)*D, :]
        out_acc = out_acc + jnp.dot(ctx_h, wo_ref[sl, :],
                                    preferred_element_type=jnp.float32)

    out_ref[...] = (out_acc + bo_ref[...]).astype(out_ref.dtype)


def pallas_attention(q_p, k_p, v_p, mask_i8, wo, bo):
    """q_p/k_p/v_p: (B, S, 256) f32, mask_i8: (B, S, S) i8 -> (output, probs)."""
    B, S, _ = q_p.shape
    tq = _pick_tile(S)
    grid = (B, S // tq)

    # TODO(synk): for very long S add a KV grid axis with online-softmax
    # accumulators (flash-style) to bound the O(S^2) per-step VMEM on v5e/v7x.
    q_spec = pl.BlockSpec((None, tq, D_HIDN), lambda b, qi: (b, qi, 0))
    kv_spec = pl.BlockSpec((None, S, D_HIDN), lambda b, qi: (b, 0, 0))
    m_spec = pl.BlockSpec((None, tq, S), lambda b, qi: (b, qi, 0))
    wo_spec = pl.BlockSpec((D_HIDN, D_HIDN), lambda b, qi: (0, 0))
    bo_spec = pl.BlockSpec((1, D_HIDN), lambda b, qi: (0, 0))
    out_spec = pl.BlockSpec((None, tq, D_HIDN), lambda b, qi: (b, qi, 0))
    prob_spec = pl.BlockSpec((None, N_HEAD, tq, S), lambda b, qi: (b, 0, qi, 0))

    return pl.pallas_call(
        _attn_kernel,
        grid=grid,
        in_specs=[q_spec, kv_spec, kv_spec, m_spec, wo_spec, bo_spec],
        out_specs=(out_spec, prob_spec),
        out_shape=(
            jax.ShapeDtypeStruct((B, S, D_HIDN), jnp.float32),
            jax.ShapeDtypeStruct((B, N_HEAD, S, S), jnp.float32),
        ),
        compiler_params=pltpu.CompilerParams(
            dimension_semantics=("parallel", "parallel")),
    )(q_p, k_p, v_p, mask_i8, wo, bo.reshape(1, D_HIDN))


# ---------------------------------------------------------------------------
# Parameter init (deterministic, synthetic; torch.nn.Linear-style bounds)
# ---------------------------------------------------------------------------
def init_params(key):
    keys = jax.random.split(key, 8)

    def linear_init(kw, kb, fan_in, fan_out):
        bound = 1.0 / math.sqrt(fan_in)
        w = jax.random.uniform(kw, (fan_in, fan_out), jnp.float32, -bound, bound)
        b = jax.random.uniform(kb, (fan_out,), jnp.float32, -bound, bound)
        return w, b

    wq, bq = linear_init(keys[0], keys[1], D_HIDN, N_HEAD * D_HEAD)
    wk, bk = linear_init(keys[2], keys[3], D_HIDN, N_HEAD * D_HEAD)
    wv, bv = linear_init(keys[4], keys[5], D_HIDN, N_HEAD * D_HEAD)
    wo, bo = linear_init(keys[6], keys[7], N_HEAD * D_HEAD, D_HIDN)
    return dict(wq=wq, bq=bq, wk=wk, bk=bk, wv=wv, bv=bv, wo=wo, bo=bo)


# ---------------------------------------------------------------------------
# Forward pass (glue in plain JAX, hot paths in Pallas; no HBM transposes)
# ---------------------------------------------------------------------------
def multi_head_attention(params, Q, K, V, attn_mask):
    B, S, _ = Q.shape
    M = B * S
    scale = 1.0 / math.sqrt(D_HEAD)

    # Fold the attention scale into W_Q / b_Q (weight-sized, one-time).
    wq_scaled = params["wq"] * scale
    bq_scaled = params["bq"] * scale

    q_p, k_p, v_p = pallas_qkv_proj(
        Q.reshape(M, D_HIDN), K.reshape(M, D_HIDN), V.reshape(M, D_HIDN),
        wq_scaled, params["wk"], params["wv"],
        bq_scaled, params["bk"], params["bv"])

    # Free reshapes only — head split happens inside the attention kernel.
    q_p = q_p.reshape(B, S, D_HIDN)
    k_p = k_p.reshape(B, S, D_HIDN)
    v_p = v_p.reshape(B, S, D_HIDN)

    mask_i8 = attn_mask.astype(jnp.int8)   # 1 byte/elem DMA instead of 4

    output, attn_prob = pallas_attention(q_p, k_p, v_p, mask_i8,
                                         params["wo"], params["bo"])
    return output, attn_prob


# ---------------------------------------------------------------------------
# Reference (plain JAX) for a sanity check
# ---------------------------------------------------------------------------
def reference_mha(params, Q, K, V, attn_mask):
    B, S, _ = Q.shape
    scale = 1.0 / math.sqrt(D_HEAD)
    q_s = (Q @ params["wq"] + params["bq"]).reshape(B, S, N_HEAD, D_HEAD).transpose(0, 2, 1, 3)
    k_s = (K @ params["wk"] + params["bk"]).reshape(B, S, N_HEAD, D_HEAD).transpose(0, 2, 1, 3)
    v_s = (V @ params["wv"] + params["bv"]).reshape(B, S, N_HEAD, D_HEAD).transpose(0, 2, 1, 3)
    scores = jnp.einsum("bhqd,bhkd->bhqk", q_s, k_s) * scale
    scores = jnp.where(attn_mask[:, None, :, :], -1e9, scores)
    probs = jax.nn.softmax(scores, axis=-1)
    ctx = jnp.einsum("bhqk,bhkd->bhqd", probs, v_s)
    ctx = ctx.transpose(0, 2, 1, 3).reshape(B, S, N_HEAD * D_HEAD)
    out = ctx @ params["wo"] + params["bo"]
    return out, probs


if __name__ == "__main__":
    B, S = 2, 8
    key = jax.random.PRNGKey(0)
    kp, kq, kk, kv, km = jax.random.split(key, 5)

    params = init_params(kp)
    Q = jax.random.normal(kq, (B, S, D_HIDN), jnp.float32)
    K = jax.random.normal(kk, (B, S, D_HIDN), jnp.float32)
    V = jax.random.normal(kv, (B, S, D_HIDN), jnp.float32)
    # random mask (True = masked), diagonal kept unmasked
    attn_mask = jax.random.bernoulli(km, 0.3, (B, S, S))
    attn_mask = attn_mask & ~jnp.eye(S, dtype=bool)[None]

    mha = jax.jit(multi_head_attention)
    out, probs = jax.block_until_ready(mha(params, Q, K, V, attn_mask))

    ref_out, ref_probs = reference_mha(params, Q, K, V, attn_mask)
    assert out.shape == (B, S, D_HIDN)
    assert probs.shape == (B, N_HEAD, S, S)
    assert jnp.allclose(out, ref_out, atol=2e-3, rtol=2e-3)
    assert jnp.allclose(probs, ref_probs, atol=2e-3, rtol=2e-3)

    print("KERNEL_OK")
</pallas_src>

<mosaic_0001>
module attributes {stable_mosaic.version = 11 : i64} {
  func.func @_qkv_proj_kernel(%arg0: i32, %arg1: memref<16x256xf32, #tpu.memory_space<vmem>>, %arg2: memref<16x256xf32, #tpu.memory_space<vmem>>, %arg3: memref<16x256xf32, #tpu.memory_space<vmem>>, %arg4: memref<256x256xf32, #tpu.memory_space<vmem>>, %arg5: memref<256x256xf32, #tpu.memory_space<vmem>>, %arg6: memref<256x256xf32, #tpu.memory_space<vmem>>, %arg7: memref<1x256xf32, #tpu.memory_space<vmem>>, %arg8: memref<1x256xf32, #tpu.memory_space<vmem>>, %arg9: memref<1x256xf32, #tpu.memory_space<vmem>>, %arg10: memref<16x256xf32, #tpu.memory_space<vmem>>, %arg11: memref<16x256xf32, #tpu.memory_space<vmem>>, %arg12: memref<16x256xf32, #tpu.memory_space<vmem>>) attributes {dimension_semantics = [#tpu.dimension_semantics<parallel>], iteration_bounds = array<i64: 1>, scalar_prefetch = 0 : i64, scratch_operands = 0 : i64, tpu.core_type = #tpu.core_type<tc>, window_params = [{transform_indices = @transform_0, window_bounds = array<i64: 16, 256>}, {transform_indices = @transform_1, window_bounds = array<i64: 16, 256>}, {transform_indices = @transform_2, window_bounds = array<i64: 16, 256>}, {pipeline_mode = #tpu.pipeline_mode<synchronous>, transform_indices = @transform_3, window_bounds = array<i64: 256, 256>}, {pipeline_mode = #tpu.pipeline_mode<synchronous>, transform_indices = @transform_4, window_bounds = array<i64: 256, 256>}, {pipeline_mode = #tpu.pipeline_mode<synchronous>, transform_indices = @transform_5, window_bounds = array<i64: 256, 256>}, {pipeline_mode = #tpu.pipeline_mode<synchronous>, transform_indices = @transform_6, window_bounds = array<i64: 1, 256>}, {pipeline_mode = #tpu.pipeline_mode<synchronous>, transform_indices = @transform_7, window_bounds = array<i64: 1, 256>}, {pipeline_mode = #tpu.pipeline_mode<synchronous>, transform_indices = @transform_8, window_bounds = array<i64: 1, 256>}, {transform_indices = @transform_9, window_bounds = array<i64: 16, 256>}, {transform_indices = @transform_10, window_bounds = array<i64: 16, 256>}, {transform_indices = @transform_11, window_bounds = array<i64: 16, 256>}]} {
    %c0 = arith.constant 0 : index
    %c0_0 = arith.constant 0 : index
    %0 = vector.load %arg1[%c0, %c0_0] : memref<16x256xf32, #tpu.memory_space<vmem>>, vector<16x256xf32>
    %c0_1 = arith.constant 0 : index
    %c0_2 = arith.constant 0 : index
    %1 = vector.load %arg4[%c0_1, %c0_2] : memref<256x256xf32, #tpu.memory_space<vmem>>, vector<256x256xf32>
    %cst = arith.constant dense<0.000000e+00> : vector<16x256xf32>
    %2 = tpu.matmul %0, %1, %cst {dimension_numbers = #tpu.dot_dimension_numbers<[1], [0], [0], [1], [0, 0, 1, 1], [], []>} : vector<16x256xf32>, vector<256x256xf32>, vector<16x256xf32> -> vector<16x256xf32>
    %c0_3 = arith.constant 0 : index
    %c0_4 = arith.constant 0 : index
    %3 = vector.load %arg7[%c0_3, %c0_4] : memref<1x256xf32, #tpu.memory_space<vmem>>, vector<1x256xf32>
    %4 = vector.broadcast %3 : vector<1x256xf32> to vector<16x256xf32>
    %5 = arith.addf %2, %4 : vector<16x256xf32>
    %c0_5 = arith.constant 0 : index
    %c0_6 = arith.constant 0 : index
    %6 = vector.load %arg10[%c0_5, %c0_6] : memref<16x256xf32, #tpu.memory_space<vmem>>, vector<16x256xf32>
    tpu.vector_store %arg10[%c0_5, %c0_6], %5 {strides = array<i32>} : memref<16x256xf32, #tpu.memory_space<vmem>>, vector<16x256xf32>,
    %c0_7 = arith.constant 0 : index
    %c0_8 = arith.constant 0 : index
    %7 = vector.load %arg2[%c0_7, %c0_8] : memref<16x256xf32, #tpu.memory_space<vmem>>, vector<16x256xf32>
    %c0_9 = arith.constant 0 : index
    %c0_10 = arith.constant 0 : index
    %8 = vector.load %arg5[%c0_9, %c0_10] : memref<256x256xf32, #tpu.memory_space<vmem>>, vector<256x256xf32>
    %cst_11 = arith.constant dense<0.000000e+00> : vector<16x256xf32>
    %9 = tpu.matmul %7, %8, %cst_11 {dimension_numbers = #tpu.dot_dimension_numbers<[1], [0], [0], [1], [0, 0, 1, 1], [], []>} : vector<16x256xf32>, vector<256x256xf32>, vector<16x256xf32> -> vector<16x256xf32>
    %c0_12 = arith.constant 0 : index
    %c0_13 = arith.constant 0 : index
    %10 = vector.load %arg8[%c0_12, %c0_13] : memref<1x256xf32, #tpu.memory_space<vmem>>, vector<1x256xf32>
    %11 = vector.broadcast %10 : vector<1x256xf32> to vector<16x256xf32>
    %12 = arith.addf %9, %11 : vector<16x256xf32>
    %c0_14 = arith.constant 0 : index
    %c0_15 = arith.constant 0 : index
    %13 = vector.load %arg11[%c0_14, %c0_15] : memref<16x256xf32, #tpu.memory_space<vmem>>, vector<16x256xf32>
    tpu.vector_store %arg11[%c0_14, %c0_15], %12 {strides = array<i32>} : memref<16x256xf32, #tpu.memory_space<vmem>>, vector<16x256xf32>,
    %c0_16 = arith.constant 0 : index
    %c0_17 = arith.constant 0 : index
    %14 = vector.load %arg3[%c0_16, %c0_17] : memref<16x256xf32, #tpu.memory_space<vmem>>, vector<16x256xf32>
    %c0_18 = arith.constant 0 : index
    %c0_19 = arith.constant 0 : index
    %15 = vector.load %arg6[%c0_18, %c0_19] : memref<256x256xf32, #tpu.memory_space<vmem>>, vector<256x256xf32>
    %cst_20 = arith.constant dense<0.000000e+00> : vector<16x256xf32>
    %16 = tpu.matmul %14, %15, %cst_20 {dimension_numbers = #tpu.dot_dimension_numbers<[1], [0], [0], [1], [0, 0, 1, 1], [], []>} : vector<16x256xf32>, vector<256x256xf32>, vector<16x256xf32> -> vector<16x256xf32>
    %c0_21 = arith.constant 0 : index
    %c0_22 = arith.constant 0 : index
    %17 = vector.load %arg9[%c0_21, %c0_22] : memref<1x256xf32, #tpu.memory_space<vmem>>, vector<1x256xf32>
    %18 = vector.broadcast %17 : vector<1x256xf32> to vector<16x256xf32>
    %19 = arith.addf %16, %18 : vector<16x256xf32>
    %c0_23 = arith.constant 0 : index
    %c0_24 = arith.constant 0 : index
    %20 = vector.load %arg12[%c0_23, %c0_24] : memref<16x256xf32, #tpu.memory_space<vmem>>, vector<16x256xf32>
    tpu.vector_store %arg12[%c0_23, %c0_24], %19 {strides = array<i32>} : memref<16x256xf32, #tpu.memory_space<vmem>>, vector<16x256xf32>,
    return
  }
  func.func @transform_0(%arg0: i32) -> (i32, i32) {
    %c0_i32 = arith.constant 0 : i32
    %c0_i32_0 = arith.constant 0 : i32
    return %arg0, %c0_i32 : i32, i32
  }
  func.func @transform_1(%arg0: i32) -> (i32, i32) {
    %c0_i32 = arith.constant 0 : i32
    %c0_i32_0 = arith.constant 0 : i32
    return %arg0, %c0_i32 : i32, i32
  }
  func.func @transform_2(%arg0: i32) -> (i32, i32) {
    %c0_i32 = arith.constant 0 : i32
    %c0_i32_0 = arith.constant 0 : i32
    return %arg0, %c0_i32 : i32, i32
  }
  func.func @transform_3(%arg0: i32) -> (i32, i32) {
    %c0_i32 = arith.constant 0 : i32
    %c0_i32_0 = arith.constant 0 : i32
    %c0_i32_1 = arith.constant 0 : i32
    return %c0_i32, %c0_i32_0 : i32, i32
  }
  func.func @transform_4(%arg0: i32) -> (i32, i32) {
    %c0_i32 = arith.constant 0 : i32
    %c0_i32_0 = arith.constant 0 : i32
    %c0_i32_1 = arith.constant 0 : i32
    return %c0_i32, %c0_i32_0 : i32, i32
  }
  func.func @transform_5(%arg0: i32) -> (i32, i32) {
    %c0_i32 = arith.constant 0 : i32
    %c0_i32_0 = arith.constant 0 : i32
    %c0_i32_1 = arith.constant 0 : i32
    return %c0_i32, %c0_i32_0 : i32, i32
  }
  func.func @transform_6(%arg0: i32) -> (i32, i32) {
    %c0_i32 = arith.constant 0 : i32
    %c0_i32_0 = arith.constant 0 : i32
    %c0_i32_1 = arith.constant 0 : i32
    return %c0_i32, %c0_i32_0 : i32, i32
  }
  func.func @transform_7(%arg0: i32) -> (i32, i32) {
    %c0_i32 = arith.constant 0 : i32
    %c0_i32_0 = arith.constant 0 : i32
    %c0_i32_1 = arith.constant 0 : i32
    return %c0_i32, %c0_i32_0 : i32, i32
  }
  func.func @transform_8(%arg0: i32) -> (i32, i32) {
    %c0_i32 = arith.constant 0 : i32
    %c0_i32_0 = arith.constant 0 : i32
    %c0_i32_1 = arith.constant 0 : i32
    return %c0_i32, %c0_i32_0 : i32, i32
  }
  func.func @transform_9(%arg0: i32) -> (i32, i32) {
    %c0_i32 = arith.constant 0 : i32
    %c0_i32_0 = arith.constant 0 : i32
    return %arg0, %c0_i32 : i32, i32
  }
  func.func @transform_10(%arg0: i32) -> (i32, i32) {
    %c0_i32 = arith.constant 0 : i32
    %c0_i32_0 = arith.constant 0 : i32
    return %arg0, %c0_i32 : i32, i32
  }
  func.func @transform_11(%arg0: i32) -> (i32, i32) {
    %c0_i32 = arith.constant 0 : i32
    %c0_i32_0 = arith.constant 0 : i32
    return %arg0, %c0_i32 : i32, i32
  }
}

module attributes {stable_mosaic.version = 11 : i64} {
  func.func @_attn_kernel(%arg0: i32, %arg1: i32, %arg2: memref<1x8x256xf32, #tpu.memory_space<vmem>>, %arg3: memref<1x8x256xf32, #tpu.memory_space<vmem>>, %arg4: memref<1x8x256xf32, #tpu.memory_space<vmem>>, %arg5: memref<1x8x8xi8, #tpu.memory_space<vmem>>, %arg6: memref<256x256xf32, #tpu.memory_space<vmem>>, %arg7: memref<1x256xf32, #tpu.memory_space<vmem>>, %arg8: memref<1x8x256xf32, #tpu.memory_space<vmem>>, %arg9: memref<1x4x8x8xf32, #tpu.memory_space<vmem>>) attributes {dimension_semantics = [#tpu.dimension_semantics<parallel>, #tpu.dimension_semantics<parallel>], iteration_bounds = array<i64: 2, 1>, scalar_prefetch = 0 : i64, scratch_operands = 0 : i64, tpu.core_type = #tpu.core_type<tc>, window_params = [{transform_indices = @transform_0, window_bounds = array<i64: 1, 8, 256>}, {transform_indices = @transform_1, window_bounds = array<i64: 1, 8, 256>}, {transform_indices = @transform_2, window_bounds = array<i64: 1, 8, 256>}, {transform_indices = @transform_3, window_bounds = array<i64: 1, 8, 8>}, {pipeline_mode = #tpu.pipeline_mode<synchronous>, transform_indices = @transform_4, window_bounds = array<i64: 256, 256>}, {pipeline_mode = #tpu.pipeline_mode<synchronous>, transform_indices = @transform_5, window_bounds = array<i64: 1, 256>}, {transform_indices = @transform_6, window_bounds = array<i64: 1, 8, 256>}, {transform_indices = @transform_7, window_bounds = array<i64: 1, 4, 8, 8>}]} {
    %c0 = arith.constant 0 : index
    %c0_0 = arith.constant 0 : index
    %c0_1 = arith.constant 0 : index
    %0 = vector.load %arg2[%c0, %c0_0, %c0_1] : memref<1x8x256xf32, #tpu.memory_space<vmem>>, vector<1x8x256xf32>
    %1 = vector.shape_cast %0 : vector<1x8x256xf32> to vector<8x256xf32>
    %c0_2 = arith.constant 0 : index
    %c0_3 = arith.constant 0 : index
    %c0_4 = arith.constant 0 : index
    %2 = vector.load %arg3[%c0_2, %c0_3, %c0_4] : memref<1x8x256xf32, #tpu.memory_space<vmem>>, vector<1x8x256xf32>
    %3 = vector.shape_cast %2 : vector<1x8x256xf32> to vector<8x256xf32>
    %c0_5 = arith.constant 0 : index
    %c0_6 = arith.constant 0 : index
    %c0_7 = arith.constant 0 : index
    %4 = vector.load %arg4[%c0_5, %c0_6, %c0_7] : memref<1x8x256xf32, #tpu.memory_space<vmem>>, vector<1x8x256xf32>
    %5 = vector.shape_cast %4 : vector<1x8x256xf32> to vector<8x256xf32>
    %c0_8 = arith.constant 0 : index
    %c0_9 = arith.constant 0 : index
    %c0_10 = arith.constant 0 : index
    %6 = vector.load %arg5[%c0_8, %c0_9, %c0_10] : memref<1x8x8xi8, #tpu.memory_space<vmem>>, vector<1x8x8xi8>
    %7 = vector.shape_cast %6 : vector<1x8x8xi8> to vector<8x8xi8>
    %8 = arith.sitofp %7 : vector<8x8xi8> to vector<8x8xf32>
    %cst = arith.constant 0.000000e+00 : f32
    %9 = vector.broadcast %cst : f32 to vector<8x8xf32>
    %10 = arith.cmpf ogt, %8, %9 : vector<8x8xf32>
    %cst_11 = arith.constant 0.000000e+00 : f32
    %11 = vector.broadcast %cst_11 : f32 to vector<8x256xf32>
    %12 = vector.extract_strided_slice %1 {offsets = [0, 0], sizes = [8, 64], strides = [1, 1]} : vector<8x256xf32> to vector<8x64xf32>
    %13 = vector.extract_strided_slice %3 {offsets = [0, 0], sizes = [8, 64], strides = [1, 1]} : vector<8x256xf32> to vector<8x64xf32>
    %14 = vector.extract_strided_slice %5 {offsets = [0, 0], sizes = [8, 64], strides = [1, 1]} : vector<8x256xf32> to vector<8x64xf32>
    %cst_12 = arith.constant dense<0.000000e+00> : vector<8x8xf32>
    %15 = tpu.matmul %12, %13, %cst_12 {dimension_numbers = #tpu.dot_dimension_numbers<[1], [1], [0], [0], [0, 0, 1, 0], [], []>} : vector<8x64xf32>, vector<8x64xf32>, vector<8x8xf32> -> vector<8x8xf32>
    %cst_13 = arith.constant -1.000000e+09 : f32
    %16 = vector.broadcast %cst_13 : f32 to vector<8x8xf32>
    %17 = arith.select %10, %16, %15 : vector<8x8xi1>, vector<8x8xf32>
    %cst_14 = arith.constant dense<0xFF800000> : vector<8xf32>
    %18 = vector.multi_reduction <maximumf>, %17, %cst_14 [1] : vector<8x8xf32> to vector<8xf32>
    %19 = vector.shape_cast %18 : vector<8xf32> to vector<8x1xf32>
    %20 = vector.broadcast %19 : vector<8x1xf32> to vector<8x8xf32>
    %21 = arith.subf %17, %20 : vector<8x8xf32>
    %22 = math.exp %21 : vector<8x8xf32>
    %cst_15 = arith.constant dense<0.000000e+00> : vector<8xf32>
    %23 = vector.multi_reduction <add>, %22, %cst_15 [1] : vector<8x8xf32> to vector<8xf32>
    %24 = vector.shape_cast %23 : vector<8xf32> to vector<8x1xf32>
    %25 = tpu.reciprocal %24 {approx = true} : vector<8x1xf32> -> vector<8x1xf32>
    %26 = vector.broadcast %25 : vector<8x1xf32> to vector<8x8xf32>
    %27 = arith.mulf %22, %26 : vector<8x8xf32>
    %c0_16 = arith.constant 0 : index
    %c0_17 = arith.constant 0 : index
    %c0_18 = arith.constant 0 : index
    %c0_19 = arith.constant 0 : index
    %28 = vector.load %arg9[%c0_16, %c0_17, %c0_18, %c0_19] : memref<1x4x8x8xf32, #tpu.memory_space<vmem>>, vector<1x1x8x8xf32>
    %29 = vector.shape_cast %28 : vector<1x1x8x8xf32> to vector<8x8xf32>
    %30 = vector.shape_cast %27 : vector<8x8xf32> to vector<1x1x8x8xf32>
    tpu.vector_store %arg9[%c0_16, %c0_17, %c0_18, %c0_19], %30 {strides = array<i32>} : memref<1x4x8x8xf32, #tpu.memory_space<vmem>>, vector<1x1x8x8xf32>,
    %cst_20 = arith.constant dense<0.000000e+00> : vector<8x64xf32>
    %31 = tpu.matmul %27, %14, %cst_20 {dimension_numbers = #tpu.dot_dimension_numbers<[1], [0], [0], [1], [0, 0, 1, 1], [], []>} : vector<8x8xf32>, vector<8x64xf32>, vector<8x64xf32> -> vector<8x64xf32>
    %c0_21 = arith.constant 0 : index
    %c0_22 = arith.constant 0 : index
    %32 = vector.load %arg6[%c0_21, %c0_22] : memref<256x256xf32, #tpu.memory_space<vmem>>, vector<64x256xf32>
    %cst_23 = arith.constant dense<0.000000e+00> : vector<8x256xf32>
    %33 = tpu.matmul %31, %32, %cst_23 {dimension_numbers = #tpu.dot_dimension_numbers<[1], [0], [0], [1], [0, 0, 1, 1], [], []>} : vector<8x64xf32>, vector<64x256xf32>, vector<8x256xf32> -> vector<8x256xf32>
    %34 = arith.addf %11, %33 : vector<8x256xf32>
    %35 = vector.extract_strided_slice %1 {offsets = [0, 64], sizes = [8, 64], strides = [1, 1]} : vector<8x256xf32> to vector<8x64xf32>
    %36 = vector.extract_strided_slice %3 {offsets = [0, 64], sizes = [8, 64], strides = [1, 1]} : vector<8x256xf32> to vector<8x64xf32>
    %37 = vector.extract_strided_slice %5 {offsets = [0, 64], sizes = [8, 64], strides = [1, 1]} : vector<8x256xf32> to vector<8x64xf32>
    %cst_24 = arith.constant dense<0.000000e+00> : vector<8x8xf32>
    %38 = tpu.matmul %35, %36, %cst_24 {dimension_numbers = #tpu.dot_dimension_numbers<[1], [1], [0], [0], [0, 0, 1, 0], [], []>} : vector<8x64xf32>, vector<8x64xf32>, vector<8x8xf32> -> vector<8x8xf32>
    %cst_25 = arith.constant -1.000000e+09 : f32
    %39 = vector.broadcast %cst_25 : f32 to vector<8x8xf32>
    %40 = arith.select %10, %39, %38 : vector<8x8xi1>, vector<8x8xf32>
    %cst_26 = arith.constant dense<0xFF800000> : vector<8xf32>
    %41 = vector.multi_reduction <maximumf>, %40, %cst_26 [1] : vector<8x8xf32> to vector<8xf32>
    %42 = vector.shape_cast %41 : vector<8xf32> to vector<8x1xf32>
    %43 = vector.broadcast %42 : vector<8x1xf32> to vector<8x8xf32>
    %44 = arith.subf %40, %43 : vector<8x8xf32>
    %45 = math.exp %44 : vector<8x8xf32>
    %cst_27 = arith.constant dense<0.000000e+00> : vector<8xf32>
    %46 = vector.multi_reduction <add>, %45, %cst_27 [1] : vector<8x8xf32> to vector<8xf32>
    %47 = vector.shape_cast %46 : vector<8xf32> to vector<8x1xf32>
    %48 = tpu.reciprocal %47 {approx = true} : vector<8x1xf32> -> vector<8x1xf32>
    %49 = vector.broadcast %48 : vector<8x1xf32> to vector<8x8xf32>
    %50 = arith.mulf %45, %49 : vector<8x8xf32>
    %c0_28 = arith.constant 0 : index
    %c1 = arith.constant 1 : index
    %c0_29 = arith.constant 0 : index
    %c0_30 = arith.constant 0 : index
    %51 = vector.load %arg9[%c0_28, %c1, %c0_29, %c0_30] : memref<1x4x8x8xf32, #tpu.memory_space<vmem>>, vector<1x1x8x8xf32>
    %52 = vector.shape_cast %51 : vector<1x1x8x8xf32> to vector<8x8xf32>
    %53 = vector.shape_cast %50 : vector<8x8xf32> to vector<1x1x8x8xf32>
    tpu.vector_store %arg9[%c0_28, %c1, %c0_29, %c0_30], %53 {strides = array<i32>} : memref<1x4x8x8xf32, #tpu.memory_space<vmem>>, vector<1x1x8x8xf32>,
    %cst_31 = arith.constant dense<0.000000e+00> : vector<8x64xf32>
    %54 = tpu.matmul %50, %37, %cst_31 {dimension_numbers = #tpu.dot_dimension_numbers<[1], [0], [0], [1], [0, 0, 1, 1], [], []>} : vector<8x8xf32>, vector<8x64xf32>, vector<8x64xf32> -> vector<8x64xf32>
    %c64 = arith.constant 64 : index
    %c0_32 = arith.constant 0 : index
    %55 = vector.load %arg6[%c64, %c0_32] : memref<256x256xf32, #tpu.memory_space<vmem>>, vector<64x256xf32>
    %cst_33 = arith.constant dense<0.000000e+00> : vector<8x256xf32>
    %56 = tpu.matmul %54, %55, %cst_33 {dimension_numbers = #tpu.dot_dimension_numbers<[1], [0], [0], [1], [0, 0, 1, 1], [], []>} : vector<8x64xf32>, vector<64x256xf32>, vector<8x256xf32> -> vector<8x256xf32>
    %57 = arith.addf %34, %56 : vector<8x256xf32>
    %58 = vector.extract_strided_slice %1 {offsets = [0, 128], sizes = [8, 64], strides = [1, 1]} : vector<8x256xf32> to vector<8x64xf32>
    %59 = vector.extract_strided_slice %3 {offsets = [0, 128], sizes = [8, 64], strides = [1, 1]} : vector<8x256xf32> to vector<8x64xf32>
    %60 = vector.extract_strided_slice %5 {offsets = [0, 128], sizes = [8, 64], strides = [1, 1]} : vector<8x256xf32> to vector<8x64xf32>
    %cst_34 = arith.constant dense<0.000000e+00> : vector<8x8xf32>
    %61 = tpu.matmul %58, %59, %cst_34 {dimension_numbers = #tpu.dot_dimension_numbers<[1], [1], [0], [0], [0, 0, 1, 0], [], []>} : vector<8x64xf32>, vector<8x64xf32>, vector<8x8xf32> -> vector<8x8xf32>
    %cst_35 = arith.constant -1.000000e+09 : f32
    %62 = vector.broadcast %cst_35 : f32 to vector<8x8xf32>
    %63 = arith.select %10, %62, %61 : vector<8x8xi1>, vector<8x8xf32>
    %cst_36 = arith.constant dense<0xFF800000> : vector<8xf32>
    %64 = vector.multi_reduction <maximumf>, %63, %cst_36 [1] : vector<8x8xf32> to vector<8xf32>
    %65 = vector.shape_cast %64 : vector<8xf32> to vector<8x1xf32>
    %66 = vector.broadcast %65 : vector<8x1xf32> to vector<8x8xf32>
    %67 = arith.subf %63, %66 : vector<8x8xf32>
    %68 = math.exp %67 : vector<8x8xf32>
    %cst_37 = arith.constant dense<0.000000e+00> : vector<8xf32>
    %69 = vector.multi_reduction <add>, %68, %cst_37 [1] : vector<8x8xf32> to vector<8xf32>
    %70 = vector.shape_cast %69 : vector<8xf32> to vector<8x1xf32>
    %71 = tpu.reciprocal %70 {approx = true} : vector<8x1xf32> -> vector<8x1xf32>
    %72 = vector.broadcast %71 : vector<8x1xf32> to vector<8x8xf32>
    %73 = arith.mulf %68, %72 : vector<8x8xf32>
    %c0_38 = arith.constant 0 : index
    %c2 = arith.constant 2 : index
    %c0_39 = arith.constant 0 : index
    %c0_40 = arith.constant 0 : index
    %74 = vector.load %arg9[%c0_38, %c2, %c0_39, %c0_40] : memref<1x4x8x8xf32, #tpu.memory_space<vmem>>, vector<1x1x8x8xf32>
    %75 = vector.shape_cast %74 : vector<1x1x8x8xf32> to vector<8x8xf32>
    %76 = vector.shape_cast %73 : vector<8x8xf32> to vector<1x1x8x8xf32>
    tpu.vector_store %arg9[%c0_38, %c2, %c0_39, %c0_40], %76 {strides = array<i32>} : memref<1x4x8x8xf32, #tpu.memory_space<vmem>>, vector<1x1x8x8xf32>,
    %cst_41 = arith.constant dense<0.000000e+00> : vector<8x64xf32>
    %77 = tpu.matmul %73, %60, %cst_41 {dimension_numbers = #tpu.dot_dimension_numbers<[1], [0], [0], [1], [0, 0, 1, 1], [], []>} : vector<8x8xf32>, vector<8x64xf32>, vector<8x64xf32> -> vector<8x64xf32>
    %c128 = arith.constant 128 : index
    %c0_42 = arith.constant 0 : index
    %78 = vector.load %arg6[%c128, %c0_42] : memref<256x256xf32, #tpu.memory_space<vmem>>, vector<64x256xf32>
    %cst_43 = arith.constant dense<0.000000e+00> : vector<8x256xf32>
    %79 = tpu.matmul %77, %78, %cst_43 {dimension_numbers = #tpu.dot_dimension_numbers<[1], [0], [0], [1], [0, 0, 1, 1], [], []>} : vector<8x64xf32>, vector<64x256xf32>, vector<8x256xf32> -> vector<8x256xf32>
    %80 = arith.addf %57, %79 : vector<8x256xf32>
    %81 = vector.extract_strided_slice %1 {offsets = [0, 192], sizes = [8, 64], strides = [1, 1]} : vector<8x256xf32> to vector<8x64xf32>
    %82 = vector.extract_strided_slice %3 {offsets = [0, 192], sizes = [8, 64], strides = [1, 1]} : vector<8x256xf32> to vector<8x64xf32>
    %83 = vector.extract_strided_slice %5 {offsets = [0, 192], sizes = [8, 64], strides = [1, 1]} : vector<8x256xf32> to vector<8x64xf32>
    %cst_44 = arith.constant dense<0.000000e+00> : vector<8x8xf32>
    %84 = tpu.matmul %81, %82, %cst_44 {dimension_numbers = #tpu.dot_dimension_numbers<[1], [1], [0], [0], [0, 0, 1, 0], [], []>} : vector<8x64xf32>, vector<8x64xf32>, vector<8x8xf32> -> vector<8x8xf32>
    %cst_45 = arith.constant -1.000000e+09 : f32
    %85 = vector.broadcast %cst_45 : f32 to vector<8x8xf32>
    %86 = arith.select %10, %85, %84 : vector<8x8xi1>, vector<8x8xf32>
    %cst_46 = arith.constant dense<0xFF800000> : vector<8xf32>
    %87 = vector.multi_reduction <maximumf>, %86, %cst_46 [1] : vector<8x8xf32> to vector<8xf32>
    %88 = vector.shape_cast %87 : vector<8xf32> to vector<8x1xf32>
    %89 = vector.broadcast %88 : vector<8x1xf32> to vector<8x8xf32>
    %90 = arith.subf %86, %89 : vector<8x8xf32>
    %91 = math.exp %90 : vector<8x8xf32>
    %cst_47 = arith.constant dense<0.000000e+00> : vector<8xf32>
    %92 = vector.multi_reduction <add>, %91, %cst_47 [1] : vector<8x8xf32> to vector<8xf32>
    %93 = vector.shape_cast %92 : vector<8xf32> to vector<8x1xf32>
    %94 = tpu.reciprocal %93 {approx = true} : vector<8x1xf32> -> vector<8x1xf32>
    %95 = vector.broadcast %94 : vector<8x1xf32> to vector<8x8xf32>
    %96 = arith.mulf %91, %95 : vector<8x8xf32>
    %c0_48 = arith.constant 0 : index
    %c3 = arith.constant 3 : index
    %c0_49 = arith.constant 0 : index
    %c0_50 = arith.constant 0 : index
    %97 = vector.load %arg9[%c0_48, %c3, %c0_49, %c0_50] : memref<1x4x8x8xf32, #tpu.memory_space<vmem>>, vector<1x1x8x8xf32>
    %98 = vector.shape_cast %97 : vector<1x1x8x8xf32> to vector<8x8xf32>
    %99 = vector.shape_cast %96 : vector<8x8xf32> to vector<1x1x8x8xf32>
    tpu.vector_store %arg9[%c0_48, %c3, %c0_49, %c0_50], %99 {strides = array<i32>} : memref<1x4x8x8xf32, #tpu.memory_space<vmem>>, vector<1x1x8x8xf32>,
    %cst_51 = arith.constant dense<0.000000e+00> : vector<8x64xf32>
    %100 = tpu.matmul %96, %83, %cst_51 {dimension_numbers = #tpu.dot_dimension_numbers<[1], [0], [0], [1], [0, 0, 1, 1], [], []>} : vector<8x8xf32>, vector<8x64xf32>, vector<8x64xf32> -> vector<8x64xf32>
    %c192 = arith.constant 192 : index
    %c0_52 = arith.constant 0 : index
    %101 = vector.load %arg6[%c192, %c0_52] : memref<256x256xf32, #tpu.memory_space<vmem>>, vector<64x256xf32>
    %cst_53 = arith.constant dense<0.000000e+00> : vector<8x256xf32>
    %102 = tpu.matmul %100, %101, %cst_53 {dimension_numbers = #tpu.dot_dimension_numbers<[1], [0], [0], [1], [0, 0, 1, 1], [], []>} : vector<8x64xf32>, vector<64x256xf32>, vector<8x256xf32> -> vector<8x256xf32>
    %103 = arith.addf %80, %102 : vector<8x256xf32>
    %c0_54 = arith.constant 0 : index
    %c0_55 = arith.constant 0 : index
    %104 = vector.load %arg7[%c0_54, %c0_55] : memref<1x256xf32, #tpu.memory_space<vmem>>, vector<1x256xf32>
    %105 = vector.broadcast %104 : vector<1x256xf32> to vector<8x256xf32>
    %106 = arith.addf %103, %105 : vector<8x256xf32>
    %c0_56 = arith.constant 0 : index
    %c0_57 = arith.constant 0 : index
    %c0_58 = arith.constant 0 : index
    %107 = vector.load %arg8[%c0_56, %c0_57, %c0_58] : memref<1x8x256xf32, #tpu.memory_space<vmem>>, vector<1x8x256xf32>
    %108 = vector.shape_cast %107 : vector<1x8x256xf32> to vector<8x256xf32>
    %109 = vector.shape_cast %106 : vector<8x256xf32> to vector<1x8x256xf32>
    tpu.vector_store %arg8[%c0_56, %c0_57, %c0_58], %109 {strides = array<i32>} : memref<1x8x256xf32, #tpu.memory_space<vmem>>, vector<1x8x256xf32>,
    return
  }
  func.func @transform_0(%arg0: i32, %arg1: i32) -> (i32, i32, i32) {
    %c0_i32 = arith.constant 0 : i32
    %c0_i32_0 = arith.constant 0 : i32
    return %arg0, %arg1, %c0_i32 : i32, i32, i32
  }
  func.func @transform_1(%arg0: i32, %arg1: i32) -> (i32, i32, i32) {
    %c0_i32 = arith.constant 0 : i32
    %c0_i32_0 = arith.constant 0 : i32
    %c0_i32_1 = arith.constant 0 : i32
    return %arg0, %c0_i32, %c0_i32_0 : i32, i32, i32
  }
  func.func @transform_2(%arg0: i32, %arg1: i32) -> (i32, i32, i32) {
    %c0_i32 = arith.constant 0 : i32
    %c0_i32_0 = arith.constant 0 : i32
    %c0_i32_1 = arith.constant 0 : i32
    return %arg0, %c0_i32, %c0_i32_0 : i32, i32, i32
  }
  func.func @transform_3(%arg0: i32, %arg1: i32) -> (i32, i32, i32) {
    %c0_i32 = arith.constant 0 : i32
    %c0_i32_0 = arith.constant 0 : i32
    return %arg0, %arg1, %c0_i32 : i32, i32, i32
  }
  func.func @transform_4(%arg0: i32, %arg1: i32) -> (i32, i32) {
    %c0_i32 = arith.constant 0 : i32
    %c0_i32_0 = arith.constant 0 : i32
    %c0_i32_1 = arith.constant 0 : i32
    return %c0_i32, %c0_i32_0 : i32, i32
  }
  func.func @transform_5(%arg0: i32, %arg1: i32) -> (i32, i32) {
    %c0_i32 = arith.constant 0 : i32
    %c0_i32_0 = arith.constant 0 : i32
    %c0_i32_1 = arith.constant 0 : i32
    return %c0_i32, %c0_i32_0 : i32, i32
  }
  func.func @transform_6(%arg0: i32, %arg1: i32) -> (i32, i32, i32) {
    %c0_i32 = arith.constant 0 : i32
    %c0_i32_0 = arith.constant 0 : i32
    return %arg0, %arg1, %c0_i32 : i32, i32, i32
  }
  func.func @transform_7(%arg0: i32, %arg1: i32) -> (i32, i32, i32, i32) {
    %c0_i32 = arith.constant 0 : i32
    %c0_i32_0 = arith.constant 0 : i32
    %c0_i32_1 = arith.constant 0 : i32
    return %arg0, %c0_i32, %arg1, %c0_i32_0 : i32, i32, i32, i32
  }
}

</mosaic_0001>

<bundles_post_ra>
// kernel: multi_head_attention.2
= control target key start
LH: loop header
LB: loop body
LE: loop exit
PB: predicated region body
PF: predicated region fallthrough
CT: control target
= control target key end

     0   :  { %17 = vsyncpa [#allocation3], 0  ;;  %s1557_s0 = inlined_call_operand.vmem [shape: f32[16,256], index: 0, kind: input, shape index: {}]   ;;  %s1558_s1 = inlined_call_operand.hbm [shape: f32[16,256], index: 1, kind: input, shape index: {}]   ;;  %s1559_s2 = inlined_call_operand.hbm [shape: f32[16,256], index: 2, kind: input, shape index: {}]   ;;  %s1560_s3 = inlined_call_operand.vmem [shape: f32[256,256], index: 3, kind: input, shape index: {}]   ;;  %s1561_s4 = inlined_call_operand.vmem [shape: f32[256,256], index: 4, kind: input, shape index: {}]   ;;  %s1562_s5 = inlined_call_operand.vmem [shape: f32[256,256], index: 5, kind: input, shape index: {}]   ;;  %s1563_s6 = inlined_call_operand.vmem [shape: f32[1,256], index: 6, kind: input, shape index: {}]   ;;  %s1564_s7 = inlined_call_operand.vmem [shape: f32[1,256], index: 7, kind: input, shape index: {}]   ;;  %s1565_s8 = inlined_call_operand.vmem [shape: f32[1,256], index: 8, kind: input, shape index: {}]   ;;  %s1566_s9 = inlined_call_operand.vmem [shape: f32[16,256], index: 9, kind: output, shape index: {0}]   ;;  %s1567_s10 = inlined_call_operand.vmem [shape: f32[16,256], index: 10, kind: output, shape index: {1}]   ;;  %s1568_s11 = inlined_call_operand.vmem [shape: f32[16,256], index: 11, kind: output, shape index: {2}]  }
   0x1   :  { %18 = vsyncpa [#allocation5], 0  ;;  %s836_s17 = smov [#allocation2]   ;;  %s788_s21 = scalar_lea.hbm %s1558_s1, 512 }
   0x2   :  { %s26_s18 = sshll.u32 %s836_s17, 4  ;;  %p789_p0 = scmp.ne.s32.totalorder %s1558_s1, %s788_s21  ;;  %s27_s18 = int_to_ptr.vmem [resolvable:$true] %s26_s18 }
   0x3   :  { %p792_p1 = scmp.lt.u32.totalorder %s788_s21, %s1558_s1 }
   0x5   :  { %p794_p2 = pnand %p792_p1, %p789_p0 }
   0x7   :  { %797 = shalt.err (!%p794_p2)
}
   0x8   :  { %s798_s26 = scalar_lea.vmem %s27_s18, 512  ;;  %p803_p4 = scmp.lt.s32.totalorder %s27_s18, %s27_s18 }
   0x9   :  { %p799_p3 = scmp.ne.s32.totalorder %s27_s18, %s798_s26  ;;  %p804_p5 = scmp.lt.s32.totalorder %s798_s26, %s798_s26 }
   0xb   :  { %p805_p6 = por %p804_p5, %p803_p4 }
   0xd   :  { %p806_p7 = pnand %p805_p6, %p799_p3 }
   0xf   :  { %809 = shalt.err (!%p806_p7)
}
  0x10   :  { %s837_s27 = smov 256   ;;  %s838_s28 = smov 16  }
  0x11   :  { %32 = dma.hbm_to_vmem [thread:$0]  %s1558_s1, 512, %s27_s18, [#allocation3], %s837_s27, %s837_s27, %s838_s28  }
  0x12   :  { %s839_s12 = smov [#allocation4]   ;;  %s810_s16 = scalar_lea.hbm %s1559_s2, 512 }
  0x13   :  { %s38_s13 = sshll.u32 %s839_s12, 4  ;;  %p811_p8 = scmp.ne.s32.totalorder %s1559_s2, %s810_s16  ;;  %s39_s13 = int_to_ptr.vmem [resolvable:$true] %s38_s13 }
  0x14   :  { %p814_p9 = scmp.lt.u32.totalorder %s810_s16, %s1559_s2 }
  0x16   :  { %p816_p10 = pnand %p814_p9, %p811_p8 }
  0x18   :  { %819 = shalt.err (!%p816_p10)
}
  0x19   :  { %s820_s22 = scalar_lea.vmem %s39_s13, 512  ;;  %p825_p12 = scmp.lt.s32.totalorder %s39_s13, %s39_s13 }
  0x1a   :  { %p821_p11 = scmp.ne.s32.totalorder %s39_s13, %s820_s22  ;;  %p826_p13 = scmp.lt.s32.totalorder %s820_s22, %s820_s22 }
  0x1c   :  { %p827_p0 = por %p826_p13, %p825_p12 }
  0x1e   :  { %p828_p1 = pnand %p827_p0, %p821_p11 }
  0x20   :  { %831 = shalt.err (!%p828_p1)
}
  0x21   :  { %44 = dma.hbm_to_vmem [thread:$0]  %s1559_s2, 512, %s39_s13, [#allocation5], %s837_s27, %s837_s27, %s838_s28  }
  0x22   :  { %832 = dma.done.wait [#allocation3], 512  }
  0x23   :  { %833 = vsyncadd [#allocation3], 4294966784 }
  0x24   :  { %834 = dma.done.wait [#allocation5], 512  }
  0x25   :  { %835 = vsyncadd [#allocation5], 4294966784  ;;  %v68_v0 = vld [vmem:[%s1560_s3 + $0x8] sm:$0xff]  ;;  %v70_v1 = vld [vmem:[%s1560_s3 + $0x18] sm:$0xff] }
  0x26   :  { %v229_v2 = vld [vmem:[%s1561_s4 + $0x8] sm:$0xff]  ;;  %v560_v3 = vpack.c.bf16 %v70_v1, %v68_v0  ;;  %v231_v4 = vld [vmem:[%s1561_s4 + $0x18] sm:$0xff]  ;;  %v67_v5 = vld [vmem:[%s1560_s3] sm:$0xff] }
  0x27   :  { %v69_v6 = vld [vmem:[%s1560_s3 + $0x10] sm:$0xff]  ;;  %v624_v7 = vpack.c.bf16 %v231_v4, %v229_v2  ;;  %v228_v9 = vld [vmem:[%s1561_s4] sm:$0xff]  ;;  %v72_v11 = vld [vmem:[%s1560_s3 + $0x28] sm:$0xff] }
  0x28   :  { %v562_v8 = vpack.c.bf16 %v69_v6, %v67_v5  ;;  %v230_v10 = vld [vmem:[%s1561_s4 + $0x10] sm:$0xff]  ;;  %561 = vmatprep.subr.bf16.mxu0 %v560_v3  ;;  %v74_v13 = vld [vmem:[%s1560_s3 + $0x38] sm:$0xff]  ;;  %v233_v14 = vld [vmem:[%s1561_s4 + $0x28] sm:$0xff] }
  0x29   :  { %v626_v12 = vpack.c.bf16 %v230_v10, %v228_v9  ;;  %v235_v15 = vld [vmem:[%s1561_s4 + $0x38] sm:$0xff]  ;;  %625 = vmatprep.subr.bf16.mxu1 %v624_v7  ;;  %v564_v16 = vpack.c.bf16 %v74_v13, %v72_v11  ;;  %v71_v18 = vld [vmem:[%s1560_s3 + $0x20] sm:$0xff]  ;;  %v73_v19 = vld [vmem:[%s1560_s3 + $0x30] sm:$0xff] }
  0x2a   :  { %563 = vmatpush1.bf16.msra.mxu0 %v562_v8  ;;  %v628_v17 = vpack.c.bf16 %v235_v15, %v233_v14  ;;  %v232_v20 = vld [vmem:[%s1561_s4 + $0x20] sm:$0xff]  ;;  %v566_v21 = vpack.c.bf16 %v73_v19, %v71_v18  ;;  %v234_v22 = vld [vmem:[%s1561_s4 + $0x30] sm:$0xff]  ;;  %v76_v23 = vld [vmem:[%s1560_s3 + $0x48] sm:$0xff] }
  0x2b   :  { %627 = vmatpush1.bf16.msra.mxu1 %v626_v12  ;;  %v78_v24 = vld [vmem:[%s1560_s3 + $0x58] sm:$0xff]  ;;  %565 = vmatprep.subr.bf16.mxu0 %v564_v16  ;;  %v630_v25 = vpack.c.bf16 %v234_v22, %v232_v20  ;;  %v237_v27 = vld [vmem:[%s1561_s4 + $0x48] sm:$0xff]  ;;  %v75_v29 = vld [vmem:[%s1560_s3 + $0x40] sm:$0xff] }
  0x2c   :  { %629 = vmatprep.subr.bf16.mxu1 %v628_v17  ;;  %v568_v26 = vpack.c.bf16 %v78_v24, %v76_v23  ;;  %v239_v28 = vld [vmem:[%s1561_s4 + $0x58] sm:$0xff]  ;;  %v77_v31 = vld [vmem:[%s1560_s3 + $0x50] sm:$0xff]  ;;  %v236_v32 = vld [vmem:[%s1561_s4 + $0x40] sm:$0xff] }
  0x2d   :  { %v632_v30 = vpack.c.bf16 %v239_v28, %v237_v27  ;;  %v238_v33 = vld [vmem:[%s1561_s4 + $0x50] sm:$0xff]  ;;  %v570_v34 = vpack.c.bf16 %v77_v31, %v75_v29  ;;  %v80_v35 = vld [vmem:[%s1560_s3 + $0x68] sm:$0xff]  ;;  %v82_v36 = vld [vmem:[%s1560_s3 + $0x78] sm:$0xff] }
  0x2e   :  { %567 = vmatpush1.bf16.msra.mxu0 %v566_v21  ;;  %v241_v37 = vld [vmem:[%s1561_s4 + $0x68] sm:$0xff]  ;;  %v634_v38 = vpack.c.bf16 %v238_v33, %v236_v32  ;;  %v572_v39 = vpack.c.bf16 %v82_v36, %v80_v35  ;;  %v243_v40 = vld [vmem:[%s1561_s4 + $0x78] sm:$0xff]  ;;  %v79_v41 = vld [vmem:[%s1560_s3 + $0x60] sm:$0xff] }
  0x2f   :  { %631 = vmatpush1.bf16.msra.mxu1 %v630_v25  ;;  %569 = vmatprep.subr.bf16.mxu0 %v568_v26  ;;  %v81_v42 = vld [vmem:[%s1560_s3 + $0x70] sm:$0xff]  ;;  %v636_v43 = vpack.c.bf16 %v243_v40, %v241_v37  ;;  %v240_v44 = vld [vmem:[%s1561_s4 + $0x60] sm:$0xff]  ;;  %v84_v46 = vld [vmem:[%s1560_s3 + $0x88] sm:$0xff] }
  0x30   :  { %633 = vmatprep.subr.bf16.mxu1 %v632_v30  ;;  %v242_v45 = vld [vmem:[%s1561_s4 + $0x70] sm:$0xff]  ;;  %v86_v47 = vld [vmem:[%s1560_s3 + $0x98] sm:$0xff]  ;;  %v245_v48 = vld [vmem:[%s1561_s4 + $0x88] sm:$0xff]  ;;  %v574_v50 = vpack.c.bf16 %v81_v42, %v79_v41 }
  0x31   :  { %v247_v49 = vld [vmem:[%s1561_s4 + $0x98] sm:$0xff]  ;;  %v638_v51 = vpack.c.bf16 %v242_v45, %v240_v44  ;;  %v576_v52 = vpack.c.bf16 %v86_v47, %v84_v46  ;;  %v83_v53 = vld [vmem:[%s1560_s3 + $0x80] sm:$0xff]  ;;  %v85_v54 = vld [vmem:[%s1560_s3 + $0x90] sm:$0xff] }
  0x32   :  { %571 = vmatpush1.bf16.msra.mxu0 %v570_v34  ;;  %v244_v55 = vld [vmem:[%s1561_s4 + $0x80] sm:$0xff]  ;;  %v640_v56 = vpack.c.bf16 %v247_v49, %v245_v48  ;;  %v246_v57 = vld [vmem:[%s1561_s4 + $0x90] sm:$0xff]  ;;  %v88_v58 = vld [vmem:[%s1560_s3 + $0xa8] sm:$0xff]  ;;  %v578_v62 = vpack.c.bf16 %v85_v54, %v83_v53 }
  0x33   :  { %635 = vmatpush1.bf16.msra.mxu1 %v634_v38  ;;  %573 = vmatprep.subr.bf16.mxu0 %v572_v39  ;;  %v90_v59 = vld [vmem:[%s1560_s3 + $0xb8] sm:$0xff]  ;;  %v249_v60 = vld [vmem:[%s1561_s4 + $0xa8] sm:$0xff]  ;;  %v642_v63 = vpack.c.bf16 %v246_v57, %v244_v55  ;;  %v87_v1 = vld [vmem:[%s1560_s3 + $0xa0] sm:$0xff] }
  0x34   :  { %637 = vmatprep.subr.bf16.mxu1 %v636_v43  ;;  %v251_v61 = vld [vmem:[%s1561_s4 + $0xb8] sm:$0xff]  ;;  %v580_v0 = vpack.c.bf16 %v90_v59, %v88_v58  ;;  %v89_v2 = vld [vmem:[%s1560_s3 + $0xb0] sm:$0xff]  ;;  %v248_v3 = vld [vmem:[%s1561_s4 + $0xa0] sm:$0xff] }
  0x35   :  { %v644_v4 = vpack.c.bf16 %v251_v61, %v249_v60  ;;  %v250_v5 = vld [vmem:[%s1561_s4 + $0xb0] sm:$0xff]  ;;  %v92_v6 = vld [vmem:[%s1560_s3 + $0xc8] sm:$0xff]  ;;  %v94_v7 = vld [vmem:[%s1560_s3 + $0xd8] sm:$0xff]  ;;  %v582_v10 = vpack.c.bf16 %v89_v2, %v87_v1 }
  0x36   :  { %575 = vmatpush1.bf16.msra.mxu0 %v574_v50  ;;  %v253_v8 = vld [vmem:[%s1561_s4 + $0xc8] sm:$0xff]  ;;  %v255_v9 = vld [vmem:[%s1561_s4 + $0xd8] sm:$0xff]  ;;  %v646_v11 = vpack.c.bf16 %v250_v5, %v248_v3  ;;  %v584_v12 = vpack.c.bf16 %v94_v7, %v92_v6  ;;  %v91_v13 = vld [vmem:[%s1560_s3 + $0xc0] sm:$0xff] }
  0x37   :  { %639 = vmatpush1.bf16.msra.mxu1 %v638_v51  ;;  %577 = vmatprep.subr.bf16.mxu0 %v576_v52  ;;  %v93_v14 = vld [vmem:[%s1560_s3 + $0xd0] sm:$0xff]  ;;  %v252_v15 = vld [vmem:[%s1561_s4 + $0xc0] sm:$0xff]  ;;  %v648_v16 = vpack.c.bf16 %v255_v9, %v253_v8  ;;  %v96_v18 = vld [vmem:[%s1560_s3 + $0xe8] sm:$0xff] }
  0x38   :  { %641 = vmatprep.subr.bf16.mxu1 %v640_v56  ;;  %v254_v17 = vld [vmem:[%s1561_s4 + $0xd0] sm:$0xff]  ;;  %v98_v19 = vld [vmem:[%s1560_s3 + $0xf8] sm:$0xff]  ;;  %v257_v20 = vld [vmem:[%s1561_s4 + $0xe8] sm:$0xff]  ;;  %v586_v22 = vpack.c.bf16 %v93_v14, %v91_v13 }
  0x39   :  { %v259_v21 = vld [vmem:[%s1561_s4 + $0xf8] sm:$0xff]  ;;  %v650_v23 = vpack.c.bf16 %v254_v17, %v252_v15  ;;  %v588_v24 = vpack.c.bf16 %v98_v19, %v96_v18  ;;  %v95_v25 = vld [vmem:[%s1560_s3 + $0xe0] sm:$0xff]  ;;  %v97_v26 = vld [vmem:[%s1560_s3 + $0xf0] sm:$0xff] }
  0x3a   :  { %579 = vmatpush1.bf16.msra.mxu0 %v578_v62  ;;  %v256_v27 = vld [vmem:[%s1561_s4 + $0xe0] sm:$0xff]  ;;  %v652_v28 = vpack.c.bf16 %v259_v21, %v257_v20  ;;  %v258_v29 = vld [vmem:[%s1561_s4 + $0xf0] sm:$0xff]  ;;  %v100_v30 = vld [vmem:[%s1560_s3 + $0x108] sm:$0xff]  ;;  %v590_v34 = vpack.c.bf16 %v97_v26, %v95_v25 }
  0x3b   :  { %643 = vmatpush1.bf16.msra.mxu1 %v642_v63  ;;  %581 = vmatprep.subr.bf16.mxu0 %v580_v0  ;;  %v102_v31 = vld [vmem:[%s1560_s3 + $0x118] sm:$0xff]  ;;  %v261_v32 = vld [vmem:[%s1561_s4 + $0x108] sm:$0xff]  ;;  %v654_v35 = vpack.c.bf16 %v258_v29, %v256_v27  ;;  %v99_v37 = vld [vmem:[%s1560_s3 + $0x100] sm:$0xff] }
  0x3c   :  { %645 = vmatprep.subr.bf16.mxu1 %v644_v4  ;;  %v263_v33 = vld [vmem:[%s1561_s4 + $0x118] sm:$0xff]  ;;  %v592_v36 = vpack.c.bf16 %v102_v31, %v100_v30  ;;  %v101_v38 = vld [vmem:[%s1560_s3 + $0x110] sm:$0xff]  ;;  %v260_v39 = vld [vmem:[%s1561_s4 + $0x100] sm:$0xff] }
  0x3d   :  { %v656_v40 = vpack.c.bf16 %v263_v33, %v261_v32  ;;  %v262_v41 = vld [vmem:[%s1561_s4 + $0x110] sm:$0xff]  ;;  %v104_v42 = vld [vmem:[%s1560_s3 + $0x128] sm:$0xff]  ;;  %v106_v43 = vld [vmem:[%s1560_s3 + $0x138] sm:$0xff]  ;;  %v594_v46 = vpack.c.bf16 %v101_v38, %v99_v37 }
  0x3e   :  { %583 = vmatpush1.bf16.msra.mxu0 %v582_v10  ;;  %v265_v44 = vld [vmem:[%s1561_s4 + $0x128] sm:$0xff]  ;;  %v267_v45 = vld [vmem:[%s1561_s4 + $0x138] sm:$0xff]  ;;  %v658_v47 = vpack.c.bf16 %v262_v41, %v260_v39  ;;  %v596_v48 = vpack.c.bf16 %v106_v43, %v104_v42  ;;  %v103_v49 = vld [vmem:[%s1560_s3 + $0x120] sm:$0xff] }
  0x3f   :  { %647 = vmatpush1.bf16.msra.mxu1 %v646_v11  ;;  %585 = vmatprep.subr.bf16.mxu0 %v584_v12  ;;  %v105_v50 = vld [vmem:[%s1560_s3 + $0x130] sm:$0xff]  ;;  %v264_v51 = vld [vmem:[%s1561_s4 + $0x120] sm:$0xff]  ;;  %v660_v52 = vpack.c.bf16 %v267_v45, %v265_v44  ;;  %v108_v54 = vld [vmem:[%s1560_s3 + $0x148] sm:$0xff] }
  0x40   :  { %649 = vmatprep.subr.bf16.mxu1 %v648_v16  ;;  %v266_v53 = vld [vmem:[%s1561_s4 + $0x130] sm:$0xff]  ;;  %v110_v55 = vld [vmem:[%s1560_s3 + $0x158] sm:$0xff]  ;;  %v269_v56 = vld [vmem:[%s1561_s4 + $0x148] sm:$0xff]  ;;  %v598_v58 = vpack.c.bf16 %v105_v50, %v103_v49 }
  0x41   :  { %v271_v57 = vld [vmem:[%s1561_s4 + $0x158] sm:$0xff]  ;;  %v662_v59 = vpack.c.bf16 %v266_v53, %v264_v51  ;;  %v600_v60 = vpack.c.bf16 %v110_v55, %v108_v54  ;;  %v107_v61 = vld [vmem:[%s1560_s3 + $0x140] sm:$0xff]  ;;  %v109_v62 = vld [vmem:[%s1560_s3 + $0x150] sm:$0xff] }
  0x42   :  { %587 = vmatpush1.bf16.msra.mxu0 %v586_v22  ;;  %v268_v63 = vld [vmem:[%s1561_s4 + $0x140] sm:$0xff]  ;;  %v664_v0 = vpack.c.bf16 %v271_v57, %v269_v56  ;;  %v270_v1 = vld [vmem:[%s1561_s4 + $0x150] sm:$0xff]  ;;  %v112_v2 = vld [vmem:[%s1560_s3 + $0x168] sm:$0xff]  ;;  %v602_v6 = vpack.c.bf16 %v109_v62, %v107_v61 }
  0x43   :  { %651 = vmatpush1.bf16.msra.mxu1 %v650_v23  ;;  %589 = vmatprep.subr.bf16.mxu0 %v588_v24  ;;  %v114_v3 = vld [vmem:[%s1560_s3 + $0x178] sm:$0xff]  ;;  %v273_v4 = vld [vmem:[%s1561_s4 + $0x168] sm:$0xff]  ;;  %v111_v7 = vld [vmem:[%s1560_s3 + $0x160] sm:$0xff]  ;;  %v666_v8 = vpack.c.bf16 %v270_v1, %v268_v63 }
  0x44   :  { %653 = vmatprep.subr.bf16.mxu1 %v652_v28  ;;  %v275_v5 = vld [vmem:[%s1561_s4 + $0x178] sm:$0xff]  ;;  %v604_v9 = vpack.c.bf16 %v114_v3, %v112_v2  ;;  %v113_v10 = vld [vmem:[%s1560_s3 + $0x170] sm:$0xff]  ;;  %v272_v11 = vld [vmem:[%s1561_s4 + $0x160] sm:$0xff] }
  0x45   :  { %v274_v12 = vld [vmem:[%s1561_s4 + $0x170] sm:$0xff]  ;;  %v668_v13 = vpack.c.bf16 %v275_v5, %v273_v4  ;;  %v116_v14 = vld [vmem:[%s1560_s3 + $0x188] sm:$0xff]  ;;  %v118_v15 = vld [vmem:[%s1560_s3 + $0x198] sm:$0xff]  ;;  %v606_v20 = vpack.c.bf16 %v113_v10, %v111_v7 }
  0x46   :  { %591 = vmatpush1.bf16.msra.mxu0 %v590_v34  ;;  %v64_v16 = vld [vmem:[%s1557_s0 + $0x8] sm:$0xff]  ;;  %v279_v18 = vld [vmem:[%s1561_s4 + $0x198] sm:$0xff]  ;;  %v670_v21 = vpack.c.bf16 %v274_v12, %v272_v11  ;;  %v608_v22 = vpack.c.bf16 %v118_v15, %v116_v14  ;;  %v115_v23 = vld [vmem:[%s1560_s3 + $0x180] sm:$0xff] }
  0x47   :  { %655 = vmatpush1.bf16.msra.mxu1 %v654_v35  ;;  %593 = vmatprep.subr.bf16.mxu0 %v592_v36  ;;  %v277_v17 = vld [vmem:[%s1561_s4 + $0x188] sm:$0xff]  ;;  %v117_v24 = vld [vmem:[%s1560_s3 + $0x190] sm:$0xff]  ;;  %v276_v25 = vld [vmem:[%s1561_s4 + $0x180] sm:$0xff] }
  0x48   :  { %657 = vmatprep.subr.bf16.mxu1 %v656_v40  ;;  %207 = vmatprep.mubr.f32.mxu0 %v64_v16  ;;  %v225_v19 = vld [vmem:[#allocation2 + $0x8] sm:$0xff]  ;;  %v672_v26 = vpack.c.bf16 %v279_v18, %v277_v17  ;;  %v278_v27 = vld [vmem:[%s1561_s4 + $0x190] sm:$0xff]  ;;  %v122_v29 = vld [vmem:[%s1560_s3 + $0x1b8] sm:$0xff]  ;;  %v610_v32 = vpack.c.bf16 %v117_v24, %v115_v23 }
  0x49   :  { %368 = vmatprep.mubr.f32.mxu1 %v225_v19  ;;  %v120_v28 = vld [vmem:[%s1560_s3 + $0x1a8] sm:$0xff]  ;;  %v283_v31 = vld [vmem:[%s1561_s4 + $0x1b8] sm:$0xff]  ;;  %v674_v33 = vpack.c.bf16 %v278_v27, %v276_v25  ;;  %v119_v35 = vld [vmem:[%s1560_s3 + $0x1a0] sm:$0xff] }
  0x4a   :  { %595 = vmatpush1.bf16.msra.mxu0 %v594_v46  ;;  %v281_v30 = vld [vmem:[%s1561_s4 + $0x1a8] sm:$0xff]  ;;  %v612_v34 = vpack.c.bf16 %v122_v29, %v120_v28  ;;  %v121_v36 = vld [vmem:[%s1560_s3 + $0x1b0] sm:$0xff]  ;;  %v280_v37 = vld [vmem:[%s1561_s4 + $0x1a0] sm:$0xff] }
  0x4b   :  { %659 = vmatpush1.bf16.msra.mxu1 %v658_v47  ;;  %597 = vmatprep.subr.bf16.mxu0 %v596_v48  ;;  %v676_v38 = vpack.c.bf16 %v283_v31, %v281_v30  ;;  %v282_v39 = vld [vmem:[%s1561_s4 + $0x1b0] sm:$0xff]  ;;  %v124_v40 = vld [vmem:[%s1560_s3 + $0x1c8] sm:$0xff]  ;;  %v126_v41 = vld [vmem:[%s1560_s3 + $0x1d8] sm:$0xff]  ;;  %v614_v44 = vpack.c.bf16 %v121_v36, %v119_v35 }
  0x4c   :  { %661 = vmatprep.subr.bf16.mxu1 %v660_v52  ;;  %v285_v42 = vld [vmem:[%s1561_s4 + $0x1c8] sm:$0xff]  ;;  %v287_v43 = vld [vmem:[%s1561_s4 + $0x1d8] sm:$0xff]  ;;  %v678_v45 = vpack.c.bf16 %v282_v39, %v280_v37  ;;  %v616_v46 = vpack.c.bf16 %v126_v41, %v124_v40  ;;  %v123_v47 = vld [vmem:[%s1560_s3 + $0x1c0] sm:$0xff] }
  0x4d   :  { %v125_v48 = vld [vmem:[%s1560_s3 + $0x1d0] sm:$0xff]  ;;  %v284_v49 = vld [vmem:[%s1561_s4 + $0x1c0] sm:$0xff]  ;;  %v680_v50 = vpack.c.bf16 %v287_v43, %v285_v42  ;;  %v128_v52 = vld [vmem:[%s1560_s3 + $0x1e8] sm:$0xff] }
  0x4e   :  { %599 = vmatpush1.bf16.msra.mxu0 %v598_v58  ;;  %v286_v51 = vld [vmem:[%s1561_s4 + $0x1d0] sm:$0xff]  ;;  %v130_v53 = vld [vmem:[%s1560_s3 + $0x1f8] sm:$0xff]  ;;  %v289_v54 = vld [vmem:[%s1561_s4 + $0x1e8] sm:$0xff]  ;;  %v618_v56 = vpack.c.bf16 %v125_v48, %v123_v47 }
  0x4f   :  { %663 = vmatpush1.bf16.msra.mxu1 %v662_v59  ;;  %601 = vmatprep.subr.bf16.mxu0 %v600_v60  ;;  %v291_v55 = vld [vmem:[%s1561_s4 + $0x1f8] sm:$0xff]  ;;  %v682_v57 = vpack.c.bf16 %v286_v51, %v284_v49  ;;  %v620_v58 = vpack.c.bf16 %v130_v53, %v128_v52  ;;  %v127_v59 = vld [vmem:[%s1560_s3 + $0x1e0] sm:$0xff]  ;;  %v129_v60 = vld [vmem:[%s1560_s3 + $0x1f0] sm:$0xff] }
  0x50   :  { %665 = vmatprep.subr.bf16.mxu1 %v664_v0  ;;  %v288_v61 = vld [vmem:[%s1561_s4 + $0x1e0] sm:$0xff]  ;;  %v684_v62 = vpack.c.bf16 %v291_v55, %v289_v54  ;;  %v290_v63 = vld [vmem:[%s1561_s4 + $0x1f0] sm:$0xff]  ;;  %v390_v0 = vld [vmem:[%s1562_s5 + $0x8] sm:$0xff]  ;;  %v622_v2 = vpack.c.bf16 %v129_v60, %v127_v59 }
  0x51   :  { %v392_v1 = vld [vmem:[%s1562_s5 + $0x18] sm:$0xff]  ;;  %v686_v3 = vpack.c.bf16 %v290_v63, %v288_v61  ;;  %v389_v5 = vld [vmem:[%s1562_s5] sm:$0xff]  ;;  %v394_v7 = vld [vmem:[%s1562_s5 + $0x28] sm:$0xff] }
  0x52   :  { %603 = vmatpush1.bf16.msra.mxu0 %v602_v6  ;;  %v688_v4 = vpack.c.bf16 %v392_v1, %v390_v0  ;;  %v391_v6 = vld [vmem:[%s1562_s5 + $0x10] sm:$0xff]  ;;  %v224_v11 = vld [vmem:[#allocation2] sm:$0xff]  ;;  %v398_v15 = vld [vmem:[%s1562_s5 + $0x48] sm:$0xff] }
  0x53   :  { %667 = vmatpush1.bf16.msra.mxu1 %v666_v8  ;;  %605 = vmatprep.subr.bf16.mxu0 %v604_v9  ;;  %v396_v8 = vld [vmem:[%s1562_s5 + $0x38] sm:$0xff]  ;;  %v63_v9 = vld [vmem:[%s1557_s0] sm:$0xff]  ;;  %v690_v10 = vpack.c.bf16 %v391_v6, %v389_v5  ;;  %v395_v14 = vld [vmem:[%s1562_s5 + $0x30] sm:$0xff] }
  0x54   :  { %669 = vmatprep.subr.bf16.mxu1 %v668_v13  ;;  %v692_v12 = vpack.c.bf16 %v396_v8, %v394_v7  ;;  %v393_v13 = vld [vmem:[%s1562_s5 + $0x20] sm:$0xff]  ;;  %v400_v16 = vld [vmem:[%s1562_s5 + $0x58] sm:$0xff]  ;;  %v399_v23 = vld [vmem:[%s1562_s5 + $0x50] sm:$0xff] }
  0x55   :  { %v66_v17 = vld [vmem:[%s1557_s0 + $0x18] sm:$0xff]  ;;  %v694_v18 = vpack.c.bf16 %v395_v14, %v393_v13  ;;  %v226_v24 = vld [vmem:[#allocation2 + $0x10] sm:$0xff]  ;;  %v402_v25 = vld [vmem:[%s1562_s5 + $0x68] sm:$0xff] }
  0x56   :  { %607 = vmatpush1.bf16.msra.mxu0 %v606_v20  ;;  %v227_v19 = vld [vmem:[#allocation2 + $0x18] sm:$0xff]  ;;  %v65_v20 = vld [vmem:[%s1557_s0 + $0x10] sm:$0xff]  ;;  %v386_v27 = vld [vmem:[#allocation4 + $0x8] sm:$0xff] }
  0x57   :  { %671 = vmatpush1.bf16.msra.mxu1 %v670_v21  ;;  %609 = vmatprep.subr.bf16.mxu0 %v608_v22  ;;  %v696_v21 = vpack.c.bf16 %v400_v16, %v398_v15  ;;  %v397_v22 = vld [vmem:[%s1562_s5 + $0x40] sm:$0xff]  ;;  %v388_v29 = vld [vmem:[#allocation4 + $0x18] sm:$0xff]  ;;  %v410_v39 = vld [vmem:[%s1562_s5 + $0xa8] sm:$0xff] }
  0x58   :  { %673 = vmatprep.subr.bf16.mxu1 %v672_v26  ;;  %v404_v26 = vld [vmem:[%s1562_s5 + $0x78] sm:$0xff]  ;;  %v698_v28 = vpack.c.bf16 %v399_v23, %v397_v22  ;;  %v401_v31 = vld [vmem:[%s1562_s5 + $0x60] sm:$0xff]  ;;  %v418_v51 = vld [vmem:[%s1562_s5 + $0xe8] sm:$0xff] }
  0x59   :  { %v700_v30 = vpack.c.bf16 %v404_v26, %v402_v25  ;;  %v405_v37 = vld [vmem:[%s1562_s5 + $0x80] sm:$0xff]  ;;  %v412_v40 = vld [vmem:[%s1562_s5 + $0xb8] sm:$0xff]  ;;  %v426_v63 = vld [vmem:[%s1562_s5 + $0x128] sm:$0xff] }
  0x5a   :  { %611 = vmatpush1.bf16.msra.mxu0 %v610_v32  ;;  %v403_v32 = vld [vmem:[%s1562_s5 + $0x70] sm:$0xff]  ;;  %v708_v42 = vpack.c.bf16 %v412_v40, %v410_v39  ;;  %v409_v43 = vld [vmem:[%s1562_s5 + $0xa0] sm:$0xff]  ;;  %v420_v52 = vld [vmem:[%s1562_s5 + $0xf8] sm:$0xff] }
  0x5b   :  { %675 = vmatpush1.bf16.msra.mxu1 %v674_v33  ;;  %613 = vmatprep.subr.bf16.mxu0 %v612_v34  ;;  %v406_v33 = vld [vmem:[%s1562_s5 + $0x88] sm:$0xff]  ;;  %v408_v34 = vld [vmem:[%s1562_s5 + $0x98] sm:$0xff]  ;;  %v702_v35 = vpack.c.bf16 %v403_v32, %v401_v31  ;;  %v413_v49 = vld [vmem:[%s1562_s5 + $0xc0] sm:$0xff]  ;;  %v716_v54 = vpack.c.bf16 %v420_v52, %v418_v51 }
  0x5c   :  { %677 = vmatprep.subr.bf16.mxu1 %v676_v38  ;;  %v704_v36 = vpack.c.bf16 %v408_v34, %v406_v33  ;;  %v407_v38 = vld [vmem:[%s1562_s5 + $0x90] sm:$0xff]  ;;  %v417_v55 = vld [vmem:[%s1562_s5 + $0xe0] sm:$0xff]  ;;  %v428_v0 = vld [vmem:[%s1562_s5 + $0x138] sm:$0xff] }
  0x5d   :  { %v706_v41 = vpack.c.bf16 %v407_v38, %v405_v37  ;;  %v421_v61 = vld [vmem:[%s1562_s5 + $0x100] sm:$0xff]  ;;  %v430_v5 = vld [vmem:[%s1562_s5 + $0x148] sm:$0xff]  ;;  %v432_v6 = vld [vmem:[%s1562_s5 + $0x158] sm:$0xff] }
  0x5e   :  { %615 = vmatpush1.bf16.msra.mxu0 %v614_v44  ;;  %v411_v44 = vld [vmem:[%s1562_s5 + $0xb0] sm:$0xff]  ;;  %v728_v8 = vpack.c.bf16 %v432_v6, %v430_v5  ;;  %v433_v15 = vld [vmem:[%s1562_s5 + $0x160] sm:$0xff]  ;;  %v442_v23 = vld [vmem:[%s1562_s5 + $0x1a8] sm:$0xff] }
  0x5f   :  { %679 = vmatpush1.bf16.msra.mxu1 %v678_v45  ;;  %617 = vmatprep.subr.bf16.mxu0 %v616_v46  ;;  %v414_v45 = vld [vmem:[%s1562_s5 + $0xc8] sm:$0xff]  ;;  %v416_v46 = vld [vmem:[%s1562_s5 + $0xd8] sm:$0xff]  ;;  %v710_v47 = vpack.c.bf16 %v411_v44, %v409_v43  ;;  %v435_v16 = vld [vmem:[%s1562_s5 + $0x170] sm:$0xff]  ;;  %v133_v44 = vlaneseq }
  0x60   :  { %681 = vmatprep.subr.bf16.mxu1 %v680_v50  ;;  %v712_v48 = vpack.c.bf16 %v416_v46, %v414_v45  ;;  %v415_v50 = vld [vmem:[%s1562_s5 + $0xd0] sm:$0xff]  ;;  %v445_v33 = vld [vmem:[%s1562_s5 + $0x1c0] sm:$0xff] }
  0x61   :  { %v714_v53 = vpack.c.bf16 %v415_v50, %v413_v49  ;;  %v439_v22 = vld [vmem:[%s1562_s5 + $0x190] sm:$0xff]  ;;  %v449_v39 = vld [vmem:[%s1562_s5 + $0x1e0] sm:$0xff]  ;;  %v134_v45 = vshrl.u32 %v133_v44, 7 }
  0x62   :  { %619 = vmatpush1.bf16.msra.mxu0 %v618_v56  ;;  %v419_v56 = vld [vmem:[%s1562_s5 + $0xf0] sm:$0xff]  ;;  %v292_v49 = vld [vmem:[%s1564_s7] sm:$0x3] }
  0x63   :  { %683 = vmatpush1.bf16.msra.mxu1 %v682_v57  ;;  %621 = vmatprep.subr.bf16.mxu0 %v620_v58  ;;  %v422_v57 = vld [vmem:[%s1562_s5 + $0x108] sm:$0xff]  ;;  %v424_v58 = vld [vmem:[%s1562_s5 + $0x118] sm:$0xff]  ;;  %v718_v59 = vpack.c.bf16 %v419_v56, %v417_v55  ;;  %v447_v34 = vld [vmem:[%s1562_s5 + $0x1d0] sm:$0xff]  ;;  %v135_v46 = vsub.s32 0, %v134_v45 }
  0x64   :  { %685 = vmatprep.subr.bf16.mxu1 %v684_v62  ;;  %v720_v60 = vpack.c.bf16 %v424_v58, %v422_v57  ;;  %v423_v62 = vld [vmem:[%s1562_s5 + $0x110] sm:$0xff]  ;;  %v746_v37 = vpack.c.bf16 %v447_v34, %v445_v33  ;;  %v453_v6 = vld [vmem:[%s1565_s8] sm:$0x3] }
  0x65   :  { %v722_v1 = vpack.c.bf16 %v423_v62, %v421_v61  ;;  %v451_v40 = vld [vmem:[%s1562_s5 + $0x1f0] sm:$0xff]  ;;  %v297_v51 = vrot.slane %v292_v49, %v135_v46 }
  0x66   :  { %623 = vmatpush1.bf16.msra.mxu0 %v622_v2  ;;  %v724_v2 = vpack.c.bf16 %v428_v0, %v426_v63  ;;  %v387_v43 = vld [vmem:[#allocation4 + $0x10] sm:$0xff] }
  0x67   :  { %687 = vmatpush1.bf16.msra.mxu1 %v686_v3  ;;  %689 = vmatprep.subr.bf16.mxu0 %v688_v4  ;;  %v425_v3 = vld [vmem:[%s1562_s5 + $0x120] sm:$0xff] }
  0x68   :  { %752 = vmatprep.subr.bf16.mxu1 %v688_v4  ;;  %v427_v4 = vld [vmem:[%s1562_s5 + $0x130] sm:$0xff] }
  0x69   :  { %208 = vmatmul.mubr.f32.vlgmr.msra.gmra.mrb[0].mxu0 %v63_v9  ;;  %v726_v7 = vpack.c.bf16 %v427_v4, %v425_v3  ;;  %v429_v9 = vld [vmem:[%s1562_s5 + $0x140] sm:$0xff] }
  0x6a   :  { %369 = vmatmul.mubr.f32.vlgmr.msra.gmra.mrb[0].mxu1 %v224_v11  ;;  %691 = vmatpush1.bf16.msra.mxu0 %v690_v10  ;;  %v434_v11 = vld [vmem:[%s1562_s5 + $0x168] sm:$0xff] }
  0x6b   :  { %768 = vmatpush1.bf16.msra.mxu1 %v690_v10  ;;  %693 = vmatprep.subr.bf16.mxu0 %v692_v12  ;;  %v431_v10 = vld [vmem:[%s1562_s5 + $0x150] sm:$0xff] }
  0x6c   :  { %753 = vmatprep.subr.bf16.mxu1 %v692_v12  ;;  %213 = vmatprep.mubr.f32.mxu0 %v66_v17  ;;  %v436_v12 = vld [vmem:[%s1562_s5 + $0x178] sm:$0xff]  ;;  %v730_v13 = vpack.c.bf16 %v431_v10, %v429_v9  ;;  %v438_v17 = vld [vmem:[%s1562_s5 + $0x188] sm:$0xff] }
  0x6d   :  { %374 = vmatprep.mubr.f32.mxu1 %v227_v19  ;;  %214 = vmatmul.mubr.f32.gmra.mrb[2].mxu0 %v65_v20  ;;  %v732_v14 = vpack.c.bf16 %v436_v12, %v434_v11  ;;  %v734_v19 = vpack.c.bf16 %v435_v16, %v433_v15 }
  0x6e   :  { %695 = vmatpush1.bf16.msra.mxu0 %v694_v18  ;;  %375 = vmatmul.mubr.f32.gmra.mrb[2].mxu1 %v226_v24  ;;  %v444_v24 = vld [vmem:[%s1562_s5 + $0x1b8] sm:$0xff] }
  0x6f   :  { %769 = vmatpush1.bf16.msra.mxu1 %v694_v18  ;;  %697 = vmatprep.subr.bf16.mxu0 %v696_v21  ;;  %v440_v18 = vld [vmem:[%s1562_s5 + $0x198] sm:$0xff]  ;;  %v740_v26 = vpack.c.bf16 %v444_v24, %v442_v23 }
  0x70   :  { %754 = vmatprep.subr.bf16.mxu1 %v696_v21  ;;  %529 = vmatprep.mubr.f32.mxu0 %v386_v27  ;;  %v736_v20 = vpack.c.bf16 %v440_v18, %v438_v17  ;;  %v437_v21 = vld [vmem:[%s1562_s5 + $0x180] sm:$0xff] }
  0x71   :  { %535 = vmatprep.mubr.f32.mxu1 %v388_v29  ;;  %v738_v25 = vpack.c.bf16 %v439_v22, %v437_v21  ;;  %v441_v27 = vld [vmem:[%s1562_s5 + $0x1a0] sm:$0xff]  ;;  %v446_v29 = vld [vmem:[%s1562_s5 + $0x1c8] sm:$0xff] }
  0x72   :  { %699 = vmatpush1.bf16.msra.mxu0 %v698_v28 }
  0x73   :  { %770 = vmatpush1.bf16.msra.mxu1 %v698_v28  ;;  %701 = vmatprep.subr.bf16.mxu0 %v700_v30  ;;  %v443_v28 = vld [vmem:[%s1562_s5 + $0x1b0] sm:$0xff] }
  0x74   :  { %755 = vmatprep.subr.bf16.mxu1 %v700_v30  ;;  %v448_v30 = vld [vmem:[%s1562_s5 + $0x1d8] sm:$0xff]  ;;  %v742_v31 = vpack.c.bf16 %v443_v28, %v441_v27 }
  0x75   :  { %v744_v32 = vpack.c.bf16 %v448_v30, %v446_v29 }
  0x76   :  { %703 = vmatpush1.bf16.msra.mxu0 %v702_v35 }
  0x77   :  { %771 = vmatpush1.bf16.msra.mxu1 %v702_v35  ;;  %705 = vmatprep.subr.bf16.mxu0 %v704_v36  ;;  %v450_v35 = vld [vmem:[%s1562_s5 + $0x1e8] sm:$0xff] }
  0x78   :  { %756 = vmatprep.subr.bf16.mxu1 %v704_v36  ;;  %v452_v36 = vld [vmem:[%s1562_s5 + $0x1f8] sm:$0xff] }
  0x79   :  { %v748_v38 = vpack.c.bf16 %v452_v36, %v450_v35 }
  0x7a   :  { %707 = vmatpush1.bf16.msra.mxu0 %v706_v41 }
  0x7b   :  { %772 = vmatpush1.bf16.msra.mxu1 %v706_v41  ;;  %709 = vmatprep.subr.bf16.mxu0 %v708_v42  ;;  %v750_v41 = vpack.c.bf16 %v451_v40, %v449_v39 }
  0x7c   :  { %757 = vmatprep.subr.bf16.mxu1 %v708_v42  ;;  %v385_v42 = vld [vmem:[#allocation4] sm:$0xff] }
  0x7e   :  { %711 = vmatpush1.bf16.msra.mxu0 %v710_v47 }
  0x7f   :  { %773 = vmatpush1.bf16.msra.mxu1 %v710_v47  ;;  %713 = vmatprep.subr.bf16.mxu0 %v712_v48  ;;  %v131_v47 = vld [vmem:[%s1563_s6] sm:$0x3] }
  0x80   :  { %758 = vmatprep.subr.bf16.mxu1 %v712_v48  ;;  %v139_v48 = vsub.s32 1, %v134_v45  ;;  %v136_v50 = vrot.slane %v131_v47, %v135_v46 }
  0x82   :  { %715 = vmatpush1.bf16.msra.mxu0 %v714_v53  ;;  %v140_v52 = vrot.slane %v131_v47, %v139_v48 }
  0x83   :  { %774 = vmatpush1.bf16.msra.mxu1 %v714_v53  ;;  %717 = vmatprep.subr.bf16.mxu0 %v716_v54  ;;  %v301_v53 = vrot.slane %v292_v49, %v139_v48 }
  0x84   :  { %759 = vmatprep.subr.bf16.mxu1 %v716_v54 }
  0x86   :  { %719 = vmatpush1.bf16.msra.mxu0 %v718_v59 }
  0x87   :  { %775 = vmatpush1.bf16.msra.mxu1 %v718_v59  ;;  %721 = vmatprep.subr.bf16.mxu0 %v720_v60 }
  0x88   :  { %760 = vmatprep.subr.bf16.mxu1 %v720_v60 }
  0x8a   :  { %723 = vmatpush1.bf16.msra.mxu0 %v722_v1 }
  0x8b   :  { %776 = vmatpush1.bf16.msra.mxu1 %v722_v1  ;;  %725 = vmatprep.subr.bf16.mxu0 %v724_v2 }
  0x8c   :  { %761 = vmatprep.subr.bf16.mxu1 %v724_v2 }
  0x8e   :  { %727 = vmatpush1.bf16.msra.mxu0 %v726_v7 }
  0x8f   :  { %777 = vmatpush1.bf16.msra.mxu1 %v726_v7  ;;  %729 = vmatprep.subr.bf16.mxu0 %v728_v8  ;;  %v458_v7 = vrot.slane %v453_v6, %v135_v46 }
  0x90   :  { %762 = vmatprep.subr.bf16.mxu1 %v728_v8  ;;  %v462_v8 = vrot.slane %v453_v6, %v139_v48 }
  0x92   :  { %731 = vmatpush1.bf16.msra.mxu0 %v730_v13 }
  0x93   :  { %778 = vmatpush1.bf16.msra.mxu1 %v730_v13  ;;  %733 = vmatprep.subr.bf16.mxu0 %v732_v14 }
  0x94   :  { %763 = vmatprep.subr.bf16.mxu1 %v732_v14 }
  0x96   :  { %735 = vmatpush1.bf16.msra.mxu0 %v734_v19 }
  0x97   :  { %779 = vmatpush1.bf16.msra.mxu1 %v734_v19  ;;  %737 = vmatprep.subr.bf16.mxu0 %v736_v20 }
  0x98   :  { %764 = vmatprep.subr.bf16.mxu1 %v736_v20 }
  0x9a   :  { %739 = vmatpush1.bf16.msra.mxu0 %v738_v25 }
  0x9b   :  { %780 = vmatpush1.bf16.msra.mxu1 %v738_v25  ;;  %741 = vmatprep.subr.bf16.mxu0 %v740_v26 }
  0x9c   :  { %765 = vmatprep.subr.bf16.mxu1 %v740_v26 }
  0x9e   :  { %743 = vmatpush1.bf16.msra.mxu0 %v742_v31 }
  0x9f   :  { %781 = vmatpush1.bf16.msra.mxu1 %v742_v31  ;;  %745 = vmatprep.subr.bf16.mxu0 %v744_v32 }
  0xa0   :  { %766 = vmatprep.subr.bf16.mxu1 %v744_v32 }
  0xa2   :  { %747 = vmatpush1.bf16.msra.mxu0 %v746_v37 }
  0xa3   :  { %782 = vmatpush1.bf16.msra.mxu1 %v746_v37  ;;  %749 = vmatprep.subr.bf16.mxu0 %v748_v38 }
  0xa4   :  { %767 = vmatprep.subr.bf16.mxu1 %v748_v38 }
  0xa6   :  { %751 = vmatpush1.bf16.msra.mxu0 %v750_v41 }
  0xa7   :  { %783 = vmatpush1.bf16.msra.mxu1 %v750_v41 }
  0xa9   :  { %530 = vmatmul.mubr.f32.vlgmr.msra.gmra.mrb[4].mxu0 %v385_v42 }
  0xaa   :  { %536 = vmatmul.mubr.f32.vlgmr.msra.gmra.mrb[4].mxu1 %v387_v43 }
 0x13c   :  { %v209_v54 = vpop.f32.mrb[0].mxu0 }
 0x13d   :  { %v210_v55 = vadd.f32 %v209_v54, %v136_v50  ;;  %v370_v56 = vpop.f32.mrb[0].mxu1  ;;  %v211_v57 = vpop.f32.mrb[1].mxu0 }
 0x13e   :  { %v371_v58 = vadd.f32 %v370_v56, %v297_v51  ;;  %v212_v59 = vadd.f32 %v211_v57, %v140_v52  ;;  %v372_v60 = vpop.f32.mrb[1].mxu1 }
 0x13f   :  { %220 = vst [vmem:[%s1566_s9] sm:$0xff] %v210_v55  ;;  %v373_v61 = vadd.f32 %v372_v60, %v301_v53 }
 0x140   :  { %381 = vst [vmem:[%s1567_s10] sm:$0xff] %v371_v58  ;;  %221 = vst [vmem:[%s1566_s9 + $0x8] sm:$0xff] %v212_v59  ;;  %v215_v62 = vpop.f32.mrb[2].mxu0 }
 0x141   :  { %382 = vst [vmem:[%s1567_s10 + $0x8] sm:$0xff] %v373_v61  ;;  %v216_v63 = vadd.f32 %v215_v62, %v136_v50  ;;  %v376_v0 = vpop.f32.mrb[2].mxu1  ;;  %v217_v1 = vpop.f32.mrb[3].mxu0 }
 0x142   :  { %v377_v2 = vadd.f32 %v376_v0, %v297_v51  ;;  %v218_v3 = vadd.f32 %v217_v1, %v140_v52  ;;  %v378_v4 = vpop.f32.mrb[3].mxu1 }
 0x143   :  { %222 = vst [vmem:[%s1566_s9 + $0x10] sm:$0xff] %v216_v63  ;;  %v379_v5 = vadd.f32 %v378_v4, %v301_v53 }
 0x144   :  { %383 = vst [vmem:[%s1567_s10 + $0x10] sm:$0xff] %v377_v2  ;;  %223 = vst [vmem:[%s1566_s9 + $0x18] sm:$0xff] %v218_v3 }
 0x145   :  { %384 = vst [vmem:[%s1567_s10 + $0x18] sm:$0xff] %v379_v5 }
 0x17c   :  { %v531_v9 = vpop.f32.mrb[4].mxu0 }
 0x17d   :  { %v532_v10 = vadd.f32 %v531_v9, %v458_v7  ;;  %v537_v11 = vpop.f32.mrb[4].mxu1  ;;  %v533_v12 = vpop.f32.mrb[5].mxu0 }
 0x17e   :  { %v538_v13 = vadd.f32 %v537_v11, %v458_v7  ;;  %v534_v14 = vadd.f32 %v533_v12, %v462_v8  ;;  %v539_v15 = vpop.f32.mrb[5].mxu1 }
 0x17f   :  { %542 = vst [vmem:[%s1568_s11] sm:$0xff] %v532_v10  ;;  %v540_v16 = vadd.f32 %v539_v15, %v462_v8 }
 0x180   :  { %544 = vst [vmem:[%s1568_s11 + $0x10] sm:$0xff] %v538_v13  ;;  %543 = vst [vmem:[%s1568_s11 + $0x8] sm:$0xff] %v534_v14 }
 0x181   :  { %545 = vst [vmem:[%s1568_s11 + $0x18] sm:$0xff] %v540_v16 }
 0x182   :  { %558 = vsyncpa [#allocation3], 1 }
 0x183   :  { %559 = vsyncpa [#allocation5], 1 }

// kernel: multi_head_attention.3
= control target key start
LH: loop header
LB: loop body
LE: loop exit
PB: predicated region body
PF: predicated region fallthrough
CT: control target
= control target key end

     0   :  { %s2500_s0 = inlined_call_operand.vmem [shape: f32[2,8,256], index: 0, kind: input, shape index: {}]   ;;  %s2501_s1 = inlined_call_operand.vmem [shape: f32[2,8,256], index: 1, kind: input, shape index: {}]   ;;  %s2502_s2 = inlined_call_operand.vmem [shape: f32[2,8,256], index: 2, kind: input, shape index: {}]   ;;  %s2503_s3 = inlined_call_operand.vmem [shape: s8[2,8,8], index: 3, kind: input, shape index: {}]   ;;  %s2504_s4 = inlined_call_operand.vmem [shape: f32[256,256], index: 4, kind: input, shape index: {}]   ;;  %s2505_s5 = inlined_call_operand.vmem [shape: f32[1,256], index: 5, kind: input, shape index: {}]   ;;  %s2506_s6 = inlined_call_operand.hbm [shape: f32[2,8,256], index: 6, kind: output, shape index: {0}]   ;;  %s2507_s7 = inlined_call_operand.hbm [shape: f32[2,4,8,8], index: 7, kind: output, shape index: {1}]  }
   0x1   :  { %2510 = sst [smem:[#allocation8_spill]] %s2500_s0 }
   0x2   :  { %2511 = sst [smem:[#allocation9_spill]] %s2501_s1 }
   0x3   :  { %2512 = sst [smem:[#allocation10_spill]] %s2502_s2 }
   0x4   :  { %13 = vsyncpa [#allocation3], 0 }
   0x5   :  { %15 = vsyncpa [#allocation3 + $0x1], 0 }
   0x6   :  { %16 = vsyncpa [#allocation5], 0 }
   0x7   :  { %18 = vsyncpa [#allocation5 + $0x1], 0  ;;  %s2044_s24 = smov 0   ;;  %s2046_s25 = smov 0  }
   0x8   :  { %s2048_s26 = smov 0   ;;  %s2050_s27 = smov 0  }
   0x9   :  { %s2052_s28 = smov 0   ;;  %s2054_s29 = smov 0  }
   0xa LB: > { %s1632_s30 = sadd.s32 4294967295, %s1995_s29   ;;  %s1633_s8 = sadd.s32 4294967294, %s1995_s29   ;;  %s1995_s29 = sphi %s2054_s29, %s24_s29   ;;  %s1991_s28 = sphi %s2052_s28, %s2523_s28   ;;  %s1987_s27 = sphi %s2050_s27, %s2522_s27   ;;  %s1983_s26 = sphi %s2048_s26, %s2521_s26   ;;  %s1979_s25 = sphi %s2046_s25, %s2520_s25   ;;  %s1975_s24 = sphi %s2044_s24, %s2519_s24  }
   0xb   : > { %s36_s9 = sadd.s32 1, %s1991_s28  ;;  %s195_s10 = sadd.s32 1, %s1983_s26 }
   0xc   : > { %p38_p0 = scmp.ge.s32.totalorder %s36_s9, 2  ;;  %p205_p1 = scmp.ne.s32.totalorder %s1983_s26, %s1979_s25 }
   0xd   : > { %p206_p2 = scmp.eq.s32.totalorder %s1632_s30, 1  ;;  %p211_p3 = scmp.ne.s32.totalorder %s1979_s25, %s1975_s24 }
   0xe   : > { %s2525_s9 = smov (%p38_p0, %s36_s9), 0  ;;  %p212_p5 = scmp.eq.s32.totalorder %s1633_s8, 1 }
   0xf   : > { %p2084_p4 = por %p206_p2, %p205_p1  ;;  %s190_s12 = ssub.s32 %s1991_s28, %s2525_s9 }
  0x10   : > { %p1636_p6 = scmp.ge.s32.totalorder %s1995_s29, 1  ;;  %p193_p7 = scmp.eq.s32.totalorder %s190_s12, 0 }
  0x11   : > { %p2091_p8 = por %p212_p5, %p211_p3  ;;  %p302_p9 = scmp.lt.s32.totalorder %s1995_s29, 3 }
  0x12   : > { %s2097_s14 = scalar_select %p193_p7, %s1983_s26, %s195_s10  }
  0x13   : > { %p303_p10 = pnand %p1636_p6, %p302_p9 }
  0x14   : > { %p360_p11 = scmp.lt.s32.totalorder (!%p303_p10), %s1987_s27, 1  ;;  %v1997_v0 = vmov (!%p303_p10), 0.0   ;;  %vm1998_vm0 = vmmov (!%p303_p10), 0   ;;  %vm396_vm1 = vcmask (!%p303_p10), 523264   ;;  %s2515_s1 = sld [smem:[#allocation9_spill]] (!%p303_p10)  ;;  %vm474_vm3 = vcmask (!%p303_p10), 64512  }
  0x15   : > { %306 = sbr.rel (%p303_p10) target bundleno = 2811 (0xafb), region = 44  ;;  %1694 = vmatprep.subr.mxu0 (!%p303_p10), %v1997_v0  ;;  %1696 = vmatprep.mubr.msk.f32.mxu0 (!%p303_p10), %vm1998_vm0, %v1997_v0  ;;  %s2516_s0 = sld [smem:[#allocation8_spill]] (!%p303_p10)  ;;  %v561_v16 = vld [vmem:[%s2504_s4 + $0x8] sm:$0xff] (!%p303_p10)  ;;  %v563_v17 = vld [vmem:[%s2504_s4 + $0x18] sm:$0xff] (!%p303_p10)  ;;  %v560_v18 = vld [vmem:[%s2504_s4] sm:$0xff] (!%p303_p10) }
  0x16   : > { %902 = vmatprep.mubr.f32.mxu1 (!%p303_p10), %v1997_v0  ;;  %s2508_s12 = smov (!%p303_p10), 64   ;;  %s2517_s2 = sld [smem:[#allocation10_spill]] (!%p303_p10)  ;;  %v1750_v19 = vpack.c.bf16 (!%p303_p10), %v563_v17, %v561_v16  ;;  %v562_v20 = vld [vmem:[%s2504_s4 + $0x10] sm:$0xff] (!%p303_p10)  ;;  %v565_v21 = vld [vmem:[%s2504_s4 + $0x28] sm:$0xff] (!%p303_p10)  ;;  %v567_v22 = vld [vmem:[%s2504_s4 + $0x38] sm:$0xff] (!%p303_p10) }
  0x17   : > { %v1752_v23 = vpack.c.bf16 (!%p303_p10), %v562_v20, %v560_v18  ;;  %v1754_v24 = vpack.c.bf16 (!%p303_p10), %v567_v22, %v565_v21  ;;  %v564_v25 = vld [vmem:[%s2504_s4 + $0x20] sm:$0xff] (!%p303_p10)  ;;  %v566_v26 = vld [vmem:[%s2504_s4 + $0x30] sm:$0xff] (!%p303_p10)  ;;  %v569_v27 = vld [vmem:[%s2504_s4 + $0x48] sm:$0xff] (!%p303_p10)  ;;  %s2195_s17 = sand.u32 (!%p303_p10), 1, %s1979_s25   ;;  %s1677_s30 = sshll.u32 (!%p303_p10), %s1987_s27, 9 }
  0x18   : > { %1751 = vmatprep.subr.bf16.mxu1 (!%p303_p10), %v1750_v19  ;;  %v571_v28 = vld [vmem:[%s2504_s4 + $0x58] sm:$0xff] (!%p303_p10)  ;;  %v1756_v29 = vpack.c.bf16 (!%p303_p10), %v566_v26, %v564_v25  ;;  %v568_v31 = vld [vmem:[%s2504_s4 + $0x40] sm:$0xff] (!%p303_p10)  ;;  %v570_v32 = vld [vmem:[%s2504_s4 + $0x50] sm:$0xff] (!%p303_p10)  ;;  %s1638_s20 = sshll.u32 (!%p303_p10), %s2195_s17, 5  ;;  %s2413_s8 = scalar_lea.hbm (!%p303_p10), %s2507_s7, %s1677_s30 }
  0x19   : > { %1753 = vmatpush1.bf16.msra.mxu1 (!%p303_p10), %v1752_v23  ;;  %v1758_v30 = vpack.c.bf16 (!%p303_p10), %v571_v28, %v569_v27  ;;  %v573_v33 = vld [vmem:[%s2504_s4 + $0x68] sm:$0xff] (!%p303_p10)  ;;  %v575_v34 = vld [vmem:[%s2504_s4 + $0x78] sm:$0xff] (!%p303_p10)  ;;  %v1760_v35 = vpack.c.bf16 (!%p303_p10), %v570_v32, %v568_v31  ;;  %v572_v37 = vld [vmem:[%s2504_s4 + $0x60] sm:$0xff] (!%p303_p10)  ;;  %s2199_s21 = scalar_lea.vmem (!%p303_p10), [#allocation4], %s1638_s20 }
  0x1a   : > { %1755 = vmatprep.subr.bf16.mxu1 (!%p303_p10), %v1754_v24  ;;  %v1762_v36 = vpack.c.bf16 (!%p303_p10), %v575_v34, %v573_v33  ;;  %v574_v38 = vld [vmem:[%s2504_s4 + $0x70] sm:$0xff] (!%p303_p10)  ;;  %v746_v57 = vld [vmem:[%s2504_s4 + $0x88] sm:$0xff] (!%p303_p10)  ;;  %v748_v58 = vld [vmem:[%s2504_s4 + $0x98] sm:$0xff] (!%p303_p10) }
  0x1b   : > { %v1764_v39 = vpack.c.bf16 (!%p303_p10), %v574_v38, %v572_v37  ;;  %v1734_v59 = vpack.c.bf16 (!%p303_p10), %v748_v58, %v746_v57  ;;  %v745_v61 = vld [vmem:[%s2504_s4 + $0x80] sm:$0xff] (!%p303_p10)  ;;  %v747_v62 = vld [vmem:[%s2504_s4 + $0x90] sm:$0xff] (!%p303_p10)  ;;  %v750_v63 = vld [vmem:[%s2504_s4 + $0xa8] sm:$0xff] (!%p303_p10) }
  0x1c   : > { %s361_s15 = scalar_select %p360_p11, %s1987_s27, 1  ;;  %v760_v16 = vld [vmem:[%s2504_s4 + $0xf8] sm:$0xff]  ;;  %v757_v19 = vld [vmem:[%s2504_s4 + $0xe0] sm:$0xff]  ;;  %v759_v20 = vld [vmem:[%s2504_s4 + $0xf0] sm:$0xff] }
  0x1d   : > { %1757 = vmatpush1.bf16.msra.mxu1 %v1756_v29  ;;  %v1748_v21 = vpack.c.bf16 %v759_v20, %v757_v19  ;;  %v1073_v38 = vld [vmem:[%s2504_s4 + $0x108] sm:$0xff]  ;;  %v1335_v19 = vld [vmem:[%s2504_s4 + $0x190] sm:$0xff] }
  0x1e   : > { %s2105_s16 = sshll.u32 %s361_s15, 4  ;;  %s1645_s23 = sshll.u32 %s361_s15, 1  ;;  %1759 = vmatprep.subr.bf16.mxu1 %v1758_v30  ;;  %v1338_v20 = vld [vmem:[%s2504_s4 + $0x1a8] sm:$0xff] }
  0x1f   : > { %s2111_s19 = scalar_lea.vmem %s2515_s1, %s2105_s16  ;;  %s2117_s22 = scalar_lea.vmem %s2516_s0, %s2105_s16 }
  0x20   : > { %v388_v1 = vld [vmem:[%s2111_s19] sm:$0xff]  ;;  %s385_s10 = scalar_lea.vmem %s2503_s3, %s1645_s23  ;;  %s2142_s18 = scalar_lea.vmem %s2517_s2, %s2105_s16  ;;  %v389_v22 = vld [vmem:[%s2111_s19 + $0x8] sm:$0xff] }
  0x21   : > { %1695 = vmatpush3.xpose.msk.msra.mxu0 %vm396_vm1, %v388_v1  ;;  %v386_v2 = vld [vmem:[%s2117_s22] sm:$0xff]  ;;  %578 = vrot.lane.b32.xlu1 %v388_v1, %s2508_s12  ;;  %s2518_s23 = smov 64   ;;  %v752_v1 = vld [vmem:[%s2504_s4 + $0xb8] sm:$0xff]  ;;  %v387_v25 = vld [vmem:[%s2117_s22 + $0x8] sm:$0xff]  ;;  %s1477_s19 = sshll.u32 %s2199_s21, 4  ;;  %s2416_s19 = int_to_ptr.vmem [resolvable:$true] %s1477_s19 }
  0x22   : > { %1699 = vmatprep.subr.mxu0 %v1997_v0  ;;  %v392_v3 = vld [vmem:[%s385_s10] sm:$0x3]  ;;  %1761 = vmatpush1.bf16.msra.mxu1 %v1760_v35  ;;  %v391_v37 = vld [vmem:[%s2142_s18 + $0x8] sm:$0xff]  ;;  %s1447_s22 = scalar_lea.sflag [#allocation5], %s2195_s17  ;;  %s1885_s10 = scalar_lea.vmem %s2416_s19, 512 }
  0x23   : > { %v393_v4 = vunpack.c.0.s8 %v392_v3  ;;  %v390_v15 = vld [vmem:[%s2142_s18] sm:$0xff]  ;;  %1763 = vmatprep.subr.bf16.mxu1 %v1762_v36  ;;  %v1736_v3 = vpack.c.bf16 %v747_v62, %v745_v61  ;;  %p1886_p12 = scmp.ne.s32.totalorder %s2416_s19, %s1885_s10  ;;  %s2000_s16 = smov [#allocation4]  }
  0x24   : > { %1697 = vmatmul.mubr.msk.f32.vlgmr.msra.gmra.mrb[0].mxu0 %vm396_vm1, %v386_v2 }
  0x25   : > { %1701 = vmatprep.mubr.msk.f32.mxu0 %vm1998_vm0, %v1997_v0  ;;  %v2129_v5 = vcvt.s32.f32 %v393_v4  ;;  %576 = vrot.lane.b32.xlu1 %v386_v2, %s2508_s12  ;;  %p1887_p13 = pnand %p1886_p12, %p2084_p4  ;;  %s1889_s12 = sshll.u32 %s2000_s16, 4  ;;  %s1890_s12 = int_to_ptr.vmem [resolvable:$false] %s1889_s12 }
  0x26   : > { %1700 = vmatpush3.msra.mxu0 %v390_v15  ;;  %1765 = vmatpush1.bf16.msra.mxu1 %v1764_v39  ;;  %v1075_v39 = vld [vmem:[%s2504_s4 + $0x118] sm:$0xff]  ;;  %s1891_s15 = scalar_lea.vmem %s1890_s12, 1024  ;;  %p1892_p1 = scmp.lt.s32.totalorder %s2416_s19, %s1890_s12 }
  0x27   : > { %vm395_vm2 = vcmp.gt.f32.partialorder %v2129_v5, 0.0  ;;  %1704 = vmatprep.subr.mxu0 %v1997_v0  ;;  %v1336_v5 = vld [vmem:[%s2504_s4 + $0x198] sm:$0xff]  ;;  %p1888_p0 = pneg %p1887_p13  ;;  %p1893_p2 = scmp.lt.s32.totalorder %s1891_s15, %s1885_s10 }
  0x29   : > { %p1894_p3 = por %p1893_p2, %p1892_p1 }
  0x2b   : > { %p1895_p5 = pnand %p1894_p3, %p1888_p0 }
  0x93   : > { %v579_v41 = vpop.permute.xlu1 %578 }
  0x97   : > { %v577_v44 = vpop.permute.xlu1 %576 }
  0xf7   : > { %v469_v6 = vpop.f32.mrb[0].mxu0 }
  0xf8   : > { %v473_v7 = vsel %vm395_vm2, -1e+09, %v469_v6  ;;  %v1698_v8 = vpop.f32.mrb[1].mxu0  ;;  %v1738_v6 = vpack.c.bf16 %v752_v1, %v750_v63 }
  0xf9   : > { %v475_v9 = vsel %vm474_vm3, %v473_v7, -inf  ;;  %v751_v8 = vld [vmem:[%s2504_s4 + $0xb0] sm:$0xff] }
  0xfa   : > { %476 = vmax.xlane.f32.xlu0 %v475_v9  ;;  %v754_v9 = vld [vmem:[%s2504_s4 + $0xc8] sm:$0xff] }
 0x187   : > { %v477_v10 = vpop.xlane.xlu0 %476 }
 0x188   : > { %v478_v11 = vsub.f32 %v473_v7, %v477_v10  ;;  %v749_v7 = vld [vmem:[%s2504_s4 + $0xa0] sm:$0xff]  ;;  %v756_v10 = vld [vmem:[%s2504_s4 + $0xd8] sm:$0xff] }
 0x18a   : > { %v479_v12 = vmul.f32 1.442695, %v478_v11  ;;  %v1740_v11 = vpack.c.bf16 %v751_v8, %v749_v7 }
 0x18c   : > { %1869 = vpow2.f32 %v479_v12  ;;  %v1742_v12 = vpack.c.bf16 %v756_v10, %v754_v9 }
 0x196   : > { %v1870_v13 = vpop.eup %1869 }
 0x197   : > { %v481_v14 = vsel %vm474_vm3, %v1870_v13, 0.0 }
 0x198   : > { %482 = vadd.xlane.f32.xlu0 %v481_v14  ;;  %v755_v14 = vld [vmem:[%s2504_s4 + $0xd0] sm:$0xff] }
 0x225   : > { %v483_v40 = vpop.xlane.xlu0 %482 }
 0x226   : > { %1871 = vrcp.f32 %v483_v40  ;;  %v1072_v40 = vld [vmem:[%s2504_s4 + $0x100] sm:$0xff] }
 0x230   : > { %v1872_v42 = vpop.eup %1871 }
 0x231   : > { %v485_v43 = vmul.f32 %v1872_v42, %v1870_v13  ;;  %v753_v13 = vld [vmem:[%s2504_s4 + $0xc0] sm:$0xff]  ;;  %v1074_v42 = vld [vmem:[%s2504_s4 + $0x110] sm:$0xff] }
 0x232   : > { %v1744_v17 = vpack.c.bf16 %v755_v14, %v753_v13 }
 0x233   : > { %1702 = vmatmul.mubr.msk.f32.vlgmr.msra.gmra.mrb[2].mxu0 %vm474_vm3, %v485_v43  ;;  %486 = vst.msk [vmem:[%s2199_s21] sm:$0xff] %vm474_vm3, %v485_v43  ;;  %v1077_v43 = vld [vmem:[%s2504_s4 + $0x128] sm:$0xff] }
 0x234   : > { %1705 = vmatpush3.xpose.msk.msra.mxu0 %vm396_vm1, %v579_v41  ;;  %1706 = vmatprep.mubr.msk.f32.mxu0 %vm1998_vm0, %v1997_v0  ;;  %v1766_v41 = vpack.c.bf16 %v1075_v39, %v1073_v38  ;;  %v1345_v38 = vld [vmem:[%s2504_s4 + $0x1e0] sm:$0xff]  ;;  %v1347_v39 = vld [vmem:[%s2504_s4 + $0x1f0] sm:$0xff] }
 0x235   : > { %1709 = vmatprep.subr.mxu0 %v1997_v0 }
 0x236   : > { %1767 = vmatprep.subr.bf16.mxu1 %v1766_v41 }
 0x237   : > { %1707 = vmatmul.mubr.msk.f32.vlgmr.msra.gmra.mrb[4].mxu0 %vm396_vm1, %v577_v44  ;;  %v1079_v44 = vld [vmem:[%s2504_s4 + $0x138] sm:$0xff] }
 0x238   : > { %1711 = vmatprep.mubr.msk.f32.mxu0 %vm1998_vm0, %v1997_v0 }
 0x306   : > { %v556_v45 = vpop.f32.mrb[2].mxu0 }
 0x307   : > { %v1703_v46 = vpop.f32.mrb[3].mxu0  ;;  %1654 = vmatmul.mubr.msk.f32.vlgmr.msra.gmra.mrb[0].mxu1 %vm396_vm1, %v556_v45  ;;  %v1768_v45 = vpack.c.bf16 %v1074_v42, %v1072_v40  ;;  %v1796_v40 = vpack.c.bf16 %v1347_v39, %v1345_v38 }
 0x308   : > { %1155 = vmatprep.mubr.f32.mxu1 %v1997_v0  ;;  %v1770_v46 = vpack.c.bf16 %v1079_v44, %v1077_v43 }
 0x309   : > { %1769 = vmatpush1.bf16.msra.mxu1 %v1768_v45 }
 0x30a   : > { %v650_v47 = vpop.f32.mrb[4].mxu0  ;;  %1771 = vmatprep.subr.bf16.mxu1 %v1770_v46 }
 0x30b   : > { %v654_v48 = vsel %vm395_vm2, -1e+09, %v650_v47  ;;  %v1708_v49 = vpop.f32.mrb[5].mxu0  ;;  %v1076_v47 = vld [vmem:[%s2504_s4 + $0x120] sm:$0xff] }
 0x30c   : > { %v655_v50 = vsel %vm474_vm3, %v654_v48, -inf  ;;  %v1081_v49 = vld [vmem:[%s2504_s4 + $0x148] sm:$0xff] }
 0x30d   : > { %656 = vmax.xlane.f32.xlu0 %v655_v50  ;;  %v1083_v50 = vld [vmem:[%s2504_s4 + $0x158] sm:$0xff] }
 0x323   : > { %669 = vrot.lane.b32.xlu0 %v390_v15, %s2518_s23  ;;  %v758_v15 = vld [vmem:[%s2504_s4 + $0xe8] sm:$0xff] }
 0x324   : > { %v1746_v18 = vpack.c.bf16 %v760_v16, %v758_v15 }
 0x39a   : > { %v657_v51 = vpop.xlane.xlu0 %656 }
 0x39b   : > { %v658_v52 = vsub.f32 %v654_v48, %v657_v51  ;;  %v1078_v48 = vld [vmem:[%s2504_s4 + $0x130] sm:$0xff] }
 0x39c   : > { %v1772_v51 = vpack.c.bf16 %v1078_v48, %v1076_v47 }
 0x39d   : > { %v659_v53 = vmul.f32 1.442695, %v658_v52  ;;  %v1774_v52 = vpack.c.bf16 %v1083_v50, %v1081_v49 }
 0x39e   : > { %v670_v56 = vpop.permute.xlu0 %669  ;;  %1773 = vmatpush1.bf16.msra.mxu1 %v1772_v51 }
 0x39f   : > { %1873 = vpow2.f32 %v659_v53  ;;  %1710 = vmatpush3.msra.mxu0 %v670_v56  ;;  %v1080_v53 = vld [vmem:[%s2504_s4 + $0x140] sm:$0xff]  ;;  %v1087_v56 = vld [vmem:[%s2504_s4 + $0x178] sm:$0xff]  ;;  %1775 = vmatprep.subr.bf16.mxu1 %v1774_v52 }
 0x3a0   : > { %1735 = vmatprep.subr.bf16.mxu0 %v1734_v59  ;;  %v1084_v59 = vld [vmem:[%s2504_s4 + $0x160] sm:$0xff] }
 0x3a9   : > { %v1874_v54 = vpop.eup %1873 }
 0x3aa   : > { %v661_v55 = vsel %vm474_vm3, %v1874_v54, 0.0 }
 0x3ab   : > { %662 = vadd.xlane.f32.xlu1 %v661_v55  ;;  %v1085_v55 = vld [vmem:[%s2504_s4 + $0x168] sm:$0xff] }
 0x3ac   : > { %v1778_v58 = vpack.c.bf16 %v1087_v56, %v1085_v55 }
 0x438   : > { %v663_v60 = vpop.xlane.xlu1 %662 }
 0x439   : > { %1875 = vrcp.f32 %v663_v60  ;;  %v1086_v60 = vld [vmem:[%s2504_s4 + $0x170] sm:$0xff] }
 0x43a   : > { %v1780_v61 = vpack.c.bf16 %v1086_v60, %v1084_v59 }
 0x443   : > { %v1876_v2 = vpop.eup %1875 }
 0x444   : > { %v665_v4 = vmul.f32 %v1876_v2, %v1874_v54  ;;  %v1082_v54 = vld [vmem:[%s2504_s4 + $0x150] sm:$0xff] }
 0x445   : > { %v1776_v57 = vpack.c.bf16 %v1082_v54, %v1080_v53 }
 0x446   : > { %1712 = vmatmul.mubr.msk.f32.vlgmr.msra.gmra.mrb[6].mxu0 %vm474_vm3, %v665_v4  ;;  %1651 = vst.msk [vmem:[%s2199_s21 + $0x8] sm:$0xff] %vm474_vm3, %v665_v4 }
 0x447   : > { %1737 = vmatpush1.bf16.msra.mxu0 %v1736_v3  ;;  %828 = vmatprep.mubr.f32.mxu0 %v1997_v0 }
 0x448   : > { %1739 = vmatprep.subr.bf16.mxu0 %v1738_v6  ;;  %1777 = vmatpush1.bf16.msra.mxu1 %v1776_v57 }
 0x449   : > { %1779 = vmatprep.subr.bf16.mxu1 %v1778_v58 }
 0x44b   : > { %1741 = vmatpush1.bf16.msra.mxu0 %v1740_v11 }
 0x44c   : > { %1743 = vmatprep.subr.bf16.mxu0 %v1742_v12  ;;  %1781 = vmatpush1.bf16.msra.mxu1 %v1780_v61 }
 0x44f   : > { %1745 = vmatpush1.bf16.msra.mxu0 %v1744_v17  ;;  %v1333_v17 = vld [vmem:[%s2504_s4 + $0x180] sm:$0xff] }
 0x450   : > { %1747 = vmatprep.subr.bf16.mxu0 %v1746_v18 }
 0x453   : > { %1749 = vmatpush1.bf16.msra.mxu0 %v1748_v21  ;;  %v1340_v21 = vld [vmem:[%s2504_s4 + $0x1b8] sm:$0xff] }
 0x454   : > { %1714 = vmatprep.subr.mxu0 %v1997_v0 }
 0x519   : > { %v741_v23 = vpop.f32.mrb[6].mxu0 }
 0x51a   : > { %v1713_v24 = vpop.f32.mrb[7].mxu0  ;;  %1653 = vmatmul.mubr.msk.f32.vlgmr.msra.gmra.mrb[8].mxu0 %vm396_vm1, %v741_v23  ;;  %v1786_v23 = vpack.c.bf16 %v1340_v21, %v1338_v20 }
 0x51b   : > { %1715 = vmatpush3.xpose.msk.msra.mxu0 %vm396_vm1, %v389_v22  ;;  %1716 = vmatprep.mubr.msk.f32.mxu0 %vm1998_vm0, %v1997_v0  ;;  %v1337_v24 = vld [vmem:[%s2504_s4 + $0x1a0] sm:$0xff] }
 0x51c   : > { %1719 = vmatprep.subr.mxu0 %v1997_v0 }
 0x51e   : > { %1717 = vmatmul.mubr.msk.f32.vlgmr.msra.gmra.mrb[10].mxu0 %vm396_vm1, %v387_v25 }
 0x51f   : > { %1721 = vmatprep.mubr.msk.f32.mxu0 %vm1998_vm0, %v1997_v0  ;;  %1720 = vmatpush3.msra.mxu0 %v391_v37 }
 0x520   : > { %1724 = vmatprep.subr.mxu0 %v1997_v0 }
 0x5ed   : > { %v2280_v26 = vpop.f32.mrb[8].mxu0 }
 0x5ee   : > { %v2282_v27 = vpop.f32.mrb[9].mxu0 }
 0x5f1   : > { %v981_v28 = vpop.f32.mrb[10].mxu0 }
 0x5f2   : > { %v985_v29 = vsel %vm395_vm2, -1e+09, %v981_v28  ;;  %v1718_v30 = vpop.f32.mrb[11].mxu0  ;;  %v1342_v28 = vld [vmem:[%s2504_s4 + $0x1c8] sm:$0xff] }
 0x5f3   : > { %v986_v31 = vsel %vm474_vm3, %v985_v29, -inf }
 0x5f4   : > { %987 = vmax.xlane.f32.xlu0 %v986_v31 }
 0x60a   : > { %1164 = vrot.lane.b32.xlu0 %v387_v25, %s2518_s23  ;;  %v1339_v25 = vld [vmem:[%s2504_s4 + $0x1b0] sm:$0xff] }
 0x60b   : > { %v1788_v30 = vpack.c.bf16 %v1339_v25, %v1337_v24 }
 0x681   : > { %v988_v32 = vpop.xlane.xlu0 %987 }
 0x682   : > { %v989_v33 = vsub.f32 %v985_v29, %v988_v32  ;;  %v1344_v29 = vld [vmem:[%s2504_s4 + $0x1d8] sm:$0xff]  ;;  %v1341_v32 = vld [vmem:[%s2504_s4 + $0x1c0] sm:$0xff] }
 0x683   : > { %v1790_v31 = vpack.c.bf16 %v1344_v29, %v1342_v28 }
 0x684   : > { %v990_v34 = vmul.f32 1.442695, %v989_v33  ;;  %v1343_v33 = vld [vmem:[%s2504_s4 + $0x1d0] sm:$0xff] }
 0x685   : > { %v1165_v3 = vpop.permute.xlu0 %1164 }
 0x686   : > { %1877 = vpow2.f32 %v990_v34  ;;  %v1346_v34 = vld [vmem:[%s2504_s4 + $0x1e8] sm:$0xff] }
 0x690   : > { %v1878_v35 = vpop.eup %1877 }
 0x691   : > { %v992_v36 = vsel %vm474_vm3, %v1878_v35, 0.0 }
 0x692   : > { %993 = vadd.xlane.f32.xlu1 %v992_v36  ;;  %v1792_v36 = vpack.c.bf16 %v1343_v33, %v1341_v32 }
 0x6a3   : > { %1166 = vrot.lane.b32.xlu1 %v389_v22, %s2518_s23  ;;  %v1784_v22 = vpack.c.bf16 %v1335_v19, %v1333_v17 }
 0x71f   : > { %v994_v62 = vpop.xlane.xlu1 %993 }
 0x720   : > { %1879 = vrcp.f32 %v994_v62 }
 0x723   : > { %v1167_v2 = vpop.permute.xlu1 %1166 }
 0x72a   : > { %v1880_v63 = vpop.eup %1879 }
 0x72b   : > { %v996_v1 = vmul.f32 %v1880_v63, %v1878_v35  ;;  %v1348_v35 = vld [vmem:[%s2504_s4 + $0x1f8] sm:$0xff] }
 0x72d   : > { %1722 = vmatmul.mubr.msk.f32.vlgmr.msra.gmra.mrb[12].mxu0 %vm474_vm3, %v996_v1  ;;  %1657 = vst.msk [vmem:[%s2199_s21 + $0x10] sm:$0xff] %vm474_vm3, %v996_v1 }
 0x72e   : > { %1725 = vmatpush3.xpose.msk.msra.mxu0 %vm396_vm1, %v1167_v2  ;;  %1726 = vmatprep.mubr.msk.f32.mxu0 %vm1998_vm0, %v1997_v0 }
 0x72f   : > { %1729 = vmatprep.subr.mxu0 %v1997_v0 }
 0x731   : > { %1727 = vmatmul.mubr.msk.f32.vlgmr.msra.gmra.mrb[14].mxu0 %vm396_vm1, %v1165_v3 }
 0x732   : > { %1731 = vmatprep.mubr.msk.f32.mxu0 %vm1998_vm0, %v1997_v0 }
 0x800   : > { %v1068_v4 = vpop.f32.mrb[12].mxu0 }
 0x801   : > { %v1723_v6 = vpop.f32.mrb[13].mxu0  ;;  %1659 = vmatmul.mubr.msk.f32.vlgmr.msra.gmra.mrb[0].mxu1 %vm396_vm1, %v1068_v4 }
 0x802   : > { %1416 = vmatprep.mubr.f32.mxu1 %v1997_v0  ;;  %v1334_v0 = vld [vmem:[%s2504_s4 + $0x188] sm:$0xff] }
 0x803   : > { %v1782_v18 = vpack.c.bf16 %v1336_v5, %v1334_v0 }
 0x804   : > { %v1238_v7 = vpop.f32.mrb[14].mxu0 }
 0x805   : > { %v1242_v8 = vsel %vm395_vm2, -1e+09, %v1238_v7  ;;  %v1728_v9 = vpop.f32.mrb[15].mxu0  ;;  %1783 = vmatprep.subr.bf16.mxu1 %v1782_v18 }
 0x806   : > { %v1243_v10 = vsel %vm474_vm3, %v1242_v8, -inf  ;;  %1785 = vmatpush1.bf16.msra.mxu1 %v1784_v22 }
 0x807   : > { %1244 = vmax.xlane.f32.xlu1 %v1243_v10  ;;  %1787 = vmatprep.subr.bf16.mxu1 %v1786_v23 }
 0x80a   : > { %1789 = vmatpush1.bf16.msra.mxu1 %v1788_v30 }
 0x80b   : > { %1791 = vmatprep.subr.bf16.mxu1 %v1790_v31 }
 0x80e   : > { %1793 = vmatpush1.bf16.msra.mxu1 %v1792_v36 }
 0x818   : > { %1257 = vrot.lane.b32.xlu1 %v391_v37, %s2518_s23  ;;  %v1794_v37 = vpack.c.bf16 %v1348_v35, %v1346_v34 }
 0x81a   : > { %1795 = vmatprep.subr.bf16.mxu1 %v1794_v37 }
 0x81b   : > { %1797 = vmatpush1.bf16.msra.mxu1 %v1796_v40 }
 0x894   : > { %v1245_v11 = vpop.xlane.xlu1 %1244 }
 0x895   : > { %v1246_v12 = vsub.f32 %v1242_v8, %v1245_v11 }
 0x897   : > { %v1247_v13 = vmul.f32 1.442695, %v1246_v12 }
 0x898   : > { %v1258_v16 = vpop.permute.xlu1 %1257 }
 0x899   : > { %1881 = vpow2.f32 %v1247_v13  ;;  %1730 = vmatpush3.msra.mxu0 %v1258_v16 }
 0x8a3   : > { %v1882_v14 = vpop.eup %1881 }
 0x8a4   : > { %v1249_v15 = vsel %vm474_vm3, %v1882_v14, 0.0 }
 0x8a5   : > { %1250 = vadd.xlane.f32.xlu0 %v1249_v15 }
 0x932   : > { %v1251_v41 = vpop.xlane.xlu0 %1250 }
 0x933   : > { %1883 = vrcp.f32 %v1251_v41 }
 0x93d   : > { %v1884_v42 = vpop.eup %1883 }
 0x93e   : > { %v1253_v43 = vmul.f32 %v1884_v42, %v1882_v14 }
 0x940   : > { %1732 = vmatmul.mubr.msk.f32.vlgmr.msra.gmra.mrb[16].mxu0 %vm474_vm3, %v1253_v43  ;;  %1662 = vst.msk [vmem:[%s2199_s21 + $0x18] sm:$0xff] %vm474_vm3, %v1253_v43 }
 0xa13   : > { %v1329_v44 = vpop.f32.mrb[16].mxu0 }
 0xa14   : > { %v1733_v45 = vpop.f32.mrb[17].mxu0  ;;  %1664 = vmatmul.mubr.msk.f32.vlgmr.msra.gmra.mrb[0].mxu1 %vm396_vm1, %v1329_v44 }
 0xa15   : > { %1898 = shalt.err (!%p1895_p5)
}
 0xa16   : > { %s1899_s21 = scalar_lea.hbm %s2413_s8, 512  ;;  %s1903_s18 = scalar_lea.hbm %s2507_s7, 1024 }
 0xa17   : > { %p1900_p6 = scmp.ne.s32.totalorder %s2413_s8, %s1899_s21  ;;  %p1904_p10 = scmp.lt.u32.totalorder %s2413_s8, %s2507_s7 }
 0xa18   : > { %p1905_p11 = scmp.lt.u32.totalorder %s1903_s18, %s1899_s21  ;;  %p1907_p13 = scmp.lt.u32.totalorder %s1899_s21, %s2413_s8 }
 0xa19   : > { %p1901_p7 = pnand %p1900_p6, %p2084_p4 }
 0xa1a   : > { %p1906_p12 = por %p1905_p11, %p1904_p10 }
 0xa1b   : > { %p1902_p9 = pneg %p1901_p7 }
 0xa1c   : > { %p1908_p0 = por %p1907_p13, %p1906_p12 }
 0xa1e   : > { %p1909_p1 = pnand %p1908_p0, %p1902_p9 }
 0xa20   : > { %1912 = shalt.err (!%p1909_p1)
}
 0xa21   : > { %s2001_s23 = smov 128   ;;  %s2002_s2 = smov 8   ;;  %v1427_v46 = vlaneseq  ;;  %v1425_v49 = vld [vmem:[%s2505_s5] sm:$0x3] }
 0xa22   : > { %1805 = dma.vmem_to_hbm [thread:$0]  (%p2084_p4), %s2416_s19, 512, %s2413_s8, %s1447_s22, %s2001_s23, %s2001_s23, %s2002_s2  }
 0xa23   : > { %v1428_v47 = vshrl.u32 %v1427_v46, 7  ;;  %s1637_s10 = sshll.u32 %s2195_s17, 4  ;;  %s1676_s15 = sshll.u32 %s1987_s27, 8 }
 0xa24   : > { %s352_s21 = scalar_lea.vmem [#allocation2], %s1637_s10  ;;  %s2452_s0 = scalar_lea.hbm %s2506_s6, %s1676_s15 }
 0xa25   : > { %v1429_v48 = vsub.s32 0, %v1428_v47  ;;  %v1433_v50 = vsub.s32 1, %v1428_v47  ;;  %s1463_s8 = sshll.u32 %s352_s21, 4  ;;  %s1442_s20 = scalar_lea.sflag [#allocation3], %s2195_s17  ;;  %s2454_s8 = int_to_ptr.vmem [resolvable:$true] %s1463_s8 }
 0xa26   : > { %s1913_s27 = scalar_lea.vmem %s2454_s8, 256  ;;  %s2003_s18 = smov [#allocation2]  }
 0xa27   : > { %v1430_v51 = vrot.slane %v1425_v49, %v1429_v48  ;;  %v1434_v53 = vrot.slane %v1425_v49, %v1433_v50  ;;  %p1914_p2 = scmp.ne.s32.totalorder %s2454_s8, %s1913_s27  ;;  %s1917_s1 = sshll.u32 %s2003_s18, 4  ;;  %s1918_s1 = int_to_ptr.vmem [resolvable:$false] %s1917_s1 }
 0xa28   : > { %s1919_s30 = scalar_lea.vmem %s1918_s1, 512  ;;  %p1920_p6 = scmp.lt.s32.totalorder %s2454_s8, %s1918_s1 }
 0xa29   : > { %p1915_p3 = pnand %p1914_p2, %p2084_p4  ;;  %p1921_p7 = scmp.lt.s32.totalorder %s1919_s30, %s1913_s27 }
 0xa2b   : > { %p1916_p5 = pneg %p1915_p3  ;;  %p1922_p9 = por %p1921_p7, %p1920_p6 }
 0xa2d   : > { %p1923_p10 = pnand %p1922_p9, %p1916_p5 }
 0xae7   : > { %v1418_v52 = vpop.f32.mrb[0].mxu1 }
 0xae8   : > { %v1798_v54 = vadd.f32 %v1418_v52, %v2280_v26  ;;  %v1420_v55 = vpop.f32.mrb[1].mxu1 }
 0xae9   : > { %v1799_v56 = vadd.f32 %v1420_v55, %v2282_v27 }
 0xaea   : > { %v1437_v57 = vadd.f32 %v1798_v54, %v1430_v51 }
 0xaeb   : > { %v1438_v58 = vadd.f32 %v1799_v56, %v1434_v53 }
 0xaec   : > { %1439 = vst [vmem:[%s352_s21] sm:$0xff] %v1437_v57 }
 0xaed   : > { %1440 = vst [vmem:[%s352_s21 + $0x8] sm:$0xff] %v1438_v58 }
 0xaee   : > { %1926 = shalt.err (!%p1923_p10)
}
 0xaef   : > { %s1927_s17 = scalar_lea.hbm %s2452_s0, 256  ;;  %s1931_s10 = scalar_lea.hbm %s2506_s6, 512 }
 0xaf0   : > { %p1928_p11 = scmp.ne.s32.totalorder %s2452_s0, %s1927_s17  ;;  %p1932_p0 = scmp.lt.u32.totalorder %s2452_s0, %s2506_s6 }
 0xaf1   : > { %p1933_p1 = scmp.lt.u32.totalorder %s1931_s10, %s1927_s17  ;;  %p1935_p3 = scmp.lt.u32.totalorder %s1927_s17, %s2452_s0 }
 0xaf2   : > { %p1929_p12 = pnand %p1928_p11, %p2084_p4 }
 0xaf3   : > { %p1934_p2 = por %p1933_p1, %p1932_p0 }
 0xaf4   : > { %p1930_p13 = pneg %p1929_p12 }
 0xaf5   : > { %p1936_p5 = por %p1935_p3, %p1934_p2 }
 0xaf7   : > { %p1937_p6 = pnand %p1936_p5, %p1930_p13 }
 0xaf9   : > { %1940 = shalt.err (!%p1937_p6)
}
 0xafa   : > { %1804 = dma.vmem_to_hbm [thread:$0]  (%p2084_p4), %s2454_s8, 256, %s2452_s0, %s1442_s20  }
 0xafb PF: > { %p1815_p7 = scmp.ge.s32.totalorder %s1995_s29, 2  ;;  %s1492_s15 = sand.u32 1, %s1975_s24  }
 0xafc   : > { %s1493_s21 = scalar_lea.sflag [#allocation3], %s1492_s15 }
 0xafd   : > { %p1809_p9 = pnand %p1815_p7, %p2091_p8 }
 0xaff   : > { %1966 = dma.done.wait (!%p1809_p9), %s1493_s21, 256  }
 0xb00   : > { %1968 = vsyncadd (!%p1809_p9), %s1493_s21, 4294967040  ;;  %s1502_s19 = scalar_lea.sflag [#allocation5], %s1492_s15 }
 0xb01   : > { %1970 = dma.done.wait (!%p1809_p9), %s1502_s19, 512  }
 0xb02   : > { %1972 = vsyncadd (!%p1809_p9), %s1502_s19, 4294966784  ;;  %s24_s29 = sadd.s32 1, %s1995_s29   ;;  %s2519_s24 = smov %s1979_s25 }
 0xb03   : > { %p21_p10 = scmp.ge.s32.totalorder %s24_s29, 4   ;;  %s2520_s25 = smov %s1983_s26 }
 0xb04   : > { %s2521_s26 = smov %s2097_s14  ;;  %s2522_s27 = smov %s1991_s28 }
 0xb05   : > { %s2523_s28 = smov %s2525_s9  ;;  %23 = sbr.rel (!%p21_p10) target bundleno = 10 (0xa), region = 108 }
 0xb0c   :  { %1507 = vsyncpa [#allocation3], 1 }
 0xb0d   :  { %1509 = vsyncpa [#allocation3 + $0x1], 1 }
 0xb0e   :  { %1510 = vsyncpa [#allocation5], 1 }
 0xb0f   :  { %1512 = vsyncpa [#allocation5 + $0x1], 1 }

</bundles_post_ra>
